<compile_context>
chip_gen: v7x
topology: tpu7x:2x2x1
jax: 0.10.0
libtpu: 0.0.40
codegen_flags: <defaults>
</compile_context>

<pallas_src>
import math
from functools import partial

import jax
import jax.numpy as jnp
from jax import lax
from jax.experimental import pallas as pl
from jax.experimental.pallas import tpu as pltpu


def _masked_mha(x, wqkv, bqkv, mask_bias, n_heads, head_dim):
    """Multi-head self-attention over a whole (R, D) slab, restricted by an additive mask.

    x:         (R, D)   native dtype (f32 / bf16)
    wqkv:      (D, 3D)  native dtype, [Wq^T * scale | Wk^T | Wv^T]
    bqkv:      (1, 3D)  f32 (scale folded into the Q part)
    mask_bias: (R, R)   f32, 0 inside a group, -1e30 outside
    Returns the head-concatenated f32 output (R, D).
    """
    R, D = x.shape
    H, E = n_heads, head_dim
    # One fused QKV projection (MXU in native dtype, f32 accumulate) + one f32 bias add.
    qkv = jnp.dot(x, wqkv, preferred_element_type=jnp.float32) + bqkv
    qkv = qkv.astype(x.dtype)
    outs = []
    for h in range(H):                                   # short static unroll over heads
        q = qkv[:, h * E:(h + 1) * E]
        k = qkv[:, D + h * E:D + (h + 1) * E]
        v = qkv[:, 2 * D + h * E:2 * D + (h + 1) * E]
        # scores = q @ k^T (contract last dims, no explicit transpose) + group mask.
        s = lax.dot_general(q, k, (((1,), (1,)), ((), ())),
                            preferred_element_type=jnp.float32) + mask_bias
        m = jnp.max(s, axis=-1, keepdims=True)
        p = jnp.exp(s - m)                               # masked entries underflow to 0
        denom = jnp.sum(p, axis=-1, keepdims=True)
        o = jnp.dot(p.astype(v.dtype), v, preferred_element_type=jnp.float32)
        outs.append(o / denom)                           # exact softmax normalisation
    return jnp.concatenate(outs, axis=-1)                # (R, D) f32, lane-dense


def _as_attention_kernel(x_ref, bias1_ref, bias2_ref,
                         wqkv1_ref, bqkv1_ref, wqkv2_ref, bqkv2_ref,
                         wo_ref, bo_ref, out_ref, *, n_heads, head_dim):
    x = x_ref[...]                                       # (R, D), native dtype
    # Stage 1: inner-group attention (masked to blocks of g consecutive channels).
    y1 = _masked_mha(x, wqkv1_ref[...], bqkv1_ref[...], bias1_ref[...], n_heads, head_dim)
    # Stage 2: inter-group attention (masked to same batch element & same position-in-group);
    # because rows never move, no rearrange is needed between (or after) the stages.
    y2 = _masked_mha(y1.astype(x.dtype), wqkv2_ref[...], bqkv2_ref[...], bias2_ref[...],
                     n_heads, head_dim)
    # Fused output projection: one (R, D) @ (D, D) matmul + f32 bias, one dense store.
    out = jnp.dot(y2.astype(wo_ref.dtype), wo_ref[...],
                  preferred_element_type=jnp.float32) + bo_ref[...]
    out_ref[...] = out.astype(out_ref.dtype)


def _pick_batch_block(B, ch, row_cap):
    """Largest BB | B with BB*ch <= row_cap and an (8, .)-tileable row block (or BB == B)."""
    candidates = [bb for bb in range(1, B + 1)
                  if B % bb == 0 and (bb == B or (bb * ch) % 8 == 0)]
    under = [bb for bb in candidates if bb * ch <= row_cap]
    return max(under) if under else min(candidates)


def as_attention_layer_forward(xl, xh, params, num_g, n_heads, *, row_cap=None,
                               vmem_limit_bytes=32 * 1024 * 1024):
    """Forward of ASAttentionLayer (kernel_size=None -> conv=Identity, mask_flag=False,
    output_attention=False, eval-mode dropout).

    params: ((wq1,bq1),(wk1,bk1),(wv1,bv1),(wq2,bq2),(wk2,bk2),(wv2,bv2),(wo,bo)),
            all in torch nn.Linear layout (W: (out, in), b: (out,)).
    Returns (attention_output, xh).
    """
    (wq1, bq1), (wk1, bk1), (wv1, bv1), (wq2, bq2), (wk2, bk2), (wv2, bv2), (wo, bo) = params
    B, ch, D = xl.shape
    assert ch % num_g == 0, "channel count must be divisible by num_g"
    assert D % n_heads == 0, "d_model must be divisible by n_heads"
    g = ch // num_g
    H = n_heads
    E = D // H
    cdt = xl.dtype                                      # dtype fed to the MXU
    scale = 1.0 / math.sqrt(E)

    # ---- wrapper-side weight plumbing (done once, outside the kernel) ----
    # y = x @ W.T + b; fuse Q/K/V into one (D, 3D) slab and fold 1/sqrt(E) into the Q part.
    def fuse_qkv(wq, bq, wk, bk, wv, bv):
        w = jnp.concatenate([wq.T.astype(jnp.float32) * scale,
                             wk.T.astype(jnp.float32),
                             wv.T.astype(jnp.float32)], axis=1)
        b = jnp.concatenate([bq.astype(jnp.float32) * scale,
                             bk.astype(jnp.float32),
                             bv.astype(jnp.float32)]).reshape(1, 3 * D)
        return w.astype(cdt), b                          # bias stays f32 (added to f32 acc)

    wqkv1, bqkv1 = fuse_qkv(wq1, bq1, wk1, bk1, wv1, bv1)
    wqkv2, bqkv2 = fuse_qkv(wq2, bq2, wk2, bk2, wv2, bv2)
    wo_t = wo.T.astype(cdt)
    bo_f = bo.astype(jnp.float32).reshape(1, D)

    # ---- grid / blocking: many whole batch elements per step ----
    if row_cap is None:
        # Bounds the masked whole-slab attention overhead vs. MXU fill / per-step overhead.
        row_cap = min(256, max(64, 2 * D))
    BB = _pick_batch_block(B, ch, row_cap)
    R = BB * ch

    # Static additive group masks (computed once, VMEM-resident via constant BlockSpecs).
    r = jnp.arange(R)
    neg = jnp.float32(-1e30)
    bias1 = jnp.where((r[:, None] // g) == (r[None, :] // g),
                      jnp.float32(0.0), neg).astype(jnp.float32)
    bias2 = jnp.where(((r[:, None] // ch) == (r[None, :] // ch))
                      & ((r[:, None] % g) == (r[None, :] % g)),
                      jnp.float32(0.0), neg).astype(jnp.float32)

    x2d = xl.reshape(B * ch, D)                          # metadata-only reshape in XLA

    x_spec = pl.BlockSpec((R, D), lambda i: (i, 0))
    out_spec = pl.BlockSpec((R, D), lambda i: (i, 0))
    const = lambda shape: pl.BlockSpec(shape, lambda i: (0, 0))   # resident, DMA'd once

    kernel = partial(_as_attention_kernel, n_heads=H, head_dim=E)

    out2d = pl.pallas_call(
        kernel,
        out_shape=jax.ShapeDtypeStruct((B * ch, D), xl.dtype),
        grid=(B // BB,),                                 # one step per batch block
        in_specs=[x_spec,
                  const((R, R)), const((R, R)),
                  const((D, 3 * D)), const((1, 3 * D)),
                  const((D, 3 * D)), const((1, 3 * D)),
                  const((D, D)), const((1, D))],
        out_specs=out_spec,
        compiler_params=pltpu.CompilerParams(
            dimension_semantics=("parallel",),           # batch blocks are independent
            vmem_limit_bytes=vmem_limit_bytes),          # safe default on v5e/v6e/v7x
    )(x2d, bias1, bias2, wqkv1, bqkv1, wqkv2, bqkv2, wo_t, bo_f)

    out = out2d.reshape(B, ch, D)

    # TODO(synk): kernel_size != None (depthwise Conv1d + BatchNorm1d on xh), mask_flag=True
    # causal masking and training-mode attention dropout are not implemented; the module
    # defaults (Identity conv, no mask, eval-mode dropout) are used, so xh passes through.
    return out, xh


# ----------------------------- reference & test harness -----------------------------

def _torch_linear_init(key, fan_in, fan_out):
    # Deterministic stand-in for nn.Linear's default U(-1/sqrt(in), 1/sqrt(in)).
    kw, kb = jax.random.split(key)
    bound = 1.0 / math.sqrt(fan_in)
    w = jax.random.uniform(kw, (fan_out, fan_in), jnp.float32, -bound, bound)
    b = jax.random.uniform(kb, (fan_out,), jnp.float32, -bound, bound)
    return w, b


def _reference(xl, xh, params, num_g, n_heads):
    (wq1, bq1), (wk1, bk1), (wv1, bv1), (wq2, bq2), (wk2, bk2), (wv2, bv2), (wo, bo) = params
    B, ch, D = xl.shape
    g = ch // num_g
    H = n_heads
    E = D // H

    def full_attention(x, wq, bq, wk, bk, wv, bv):
        Nb, L, _ = x.shape
        Q = (x @ wq.T + bq).reshape(Nb, L, H, E)
        K = (x @ wk.T + bk).reshape(Nb, L, H, E)
        V = (x @ wv.T + bv).reshape(Nb, L, H, E)
        s = jnp.einsum('blhe,bshe->bhls', Q, K) / math.sqrt(E)
        A = jax.nn.softmax(s, axis=-1)
        return jnp.einsum('bhls,bshe->blhe', A, V).reshape(Nb, L, D)

    with jax.default_matmul_precision("highest"):
        x1 = xl.reshape(B * num_g, g, D)
        y1 = full_attention(x1, wq1, bq1, wk1, bk1, wv1, bv1)
        x2 = y1.reshape(B, num_g, g, D).transpose(0, 2, 1, 3).reshape(B * g, num_g, D)
        y2 = full_attention(x2, wq2, bq2, wk2, bk2, wv2, bv2)
        y2 = y2.reshape(B, g, num_g, D).transpose(0, 2, 1, 3).reshape(B, ch, D)
        return y2 @ wo.T + bo, xh


if __name__ == "__main__":
    B, num_g, g, d_model, n_heads = 2, 2, 4, 32, 4
    ch = num_g * g
    c_in, xh_len = 7, 16

    key = jax.random.PRNGKey(0)
    k_xl, k_xh, *k_lin = jax.random.split(key, 2 + 7)

    xl = jax.random.normal(k_xl, (B, ch, d_model), jnp.float32)
    xh = jax.random.normal(k_xh, (B, c_in, xh_len), jnp.float32)
    # Linears in order: q1, k1, v1, q2, k2, v2, out_projection.
    params = tuple(_torch_linear_init(k, d_model, d_model) for k in k_lin)

    out, xh_out = as_attention_layer_forward(xl, xh, params, num_g, n_heads)
    out, xh_out = jax.block_until_ready((out, xh_out))

    ref_out, _ = _reference(xl, xh, params, num_g, n_heads)
    err = float(jnp.max(jnp.abs(out - ref_out)))
    # Exact softmax normalisation + f32 matmul accumulation -> tight f32 tolerance.
    assert jnp.allclose(out, ref_out, atol=2e-3, rtol=2e-3), err
    assert jnp.array_equal(xh_out, xh)

    # bf16 path: activations/weights hit the MXU in bf16 (f32 accumulation everywhere);
    # checked for accuracy against the f32 reference with a bf16-appropriate tolerance.
    xl_bf16 = xl.astype(jnp.bfloat16)
    params_bf16 = jax.tree_util.tree_map(lambda a: a.astype(jnp.bfloat16), params)
    out_bf16, _ = as_attention_layer_forward(xl_bf16, xh, params_bf16, num_g, n_heads)
    out_bf16 = jax.block_until_ready(out_bf16).astype(jnp.float32)
    err_bf16 = float(jnp.max(jnp.abs(out_bf16 - ref_out)))
    assert jnp.allclose(out_bf16, ref_out, atol=1e-1, rtol=1e-1), err_bf16

    print("KERNEL_OK")
</pallas_src>

<mosaic_0001>
module attributes {stable_mosaic.version = 11 : i64} {
  func.func @_as_attention_kernel(%arg0: i32, %arg1: memref<16x32xf32, #tpu.memory_space<vmem>>, %arg2: memref<16x16xf32, #tpu.memory_space<vmem>>, %arg3: memref<16x16xf32, #tpu.memory_space<vmem>>, %arg4: memref<32x96xf32, #tpu.memory_space<vmem>>, %arg5: memref<1x96xf32, #tpu.memory_space<vmem>>, %arg6: memref<32x96xf32, #tpu.memory_space<vmem>>, %arg7: memref<1x96xf32, #tpu.memory_space<vmem>>, %arg8: memref<32x32xf32, #tpu.memory_space<vmem>>, %arg9: memref<1x32xf32, #tpu.memory_space<vmem>>, %arg10: memref<16x32xf32, #tpu.memory_space<vmem>>) attributes {dimension_semantics = [#tpu.dimension_semantics<parallel>], iteration_bounds = array<i64: 1>, scalar_prefetch = 0 : i64, scratch_operands = 0 : i64, tpu.core_type = #tpu.core_type<tc>, window_params = [{transform_indices = @transform_0, window_bounds = array<i64: 16, 32>}, {pipeline_mode = #tpu.pipeline_mode<synchronous>, transform_indices = @transform_1, window_bounds = array<i64: 16, 16>}, {pipeline_mode = #tpu.pipeline_mode<synchronous>, transform_indices = @transform_2, window_bounds = array<i64: 16, 16>}, {pipeline_mode = #tpu.pipeline_mode<synchronous>, transform_indices = @transform_3, window_bounds = array<i64: 32, 96>}, {pipeline_mode = #tpu.pipeline_mode<synchronous>, transform_indices = @transform_4, window_bounds = array<i64: 1, 96>}, {pipeline_mode = #tpu.pipeline_mode<synchronous>, transform_indices = @transform_5, window_bounds = array<i64: 32, 96>}, {pipeline_mode = #tpu.pipeline_mode<synchronous>, transform_indices = @transform_6, window_bounds = array<i64: 1, 96>}, {pipeline_mode = #tpu.pipeline_mode<synchronous>, transform_indices = @transform_7, window_bounds = array<i64: 32, 32>}, {pipeline_mode = #tpu.pipeline_mode<synchronous>, transform_indices = @transform_8, window_bounds = array<i64: 1, 32>}, {transform_indices = @transform_9, window_bounds = array<i64: 16, 32>}]} {
    %c0 = arith.constant 0 : index
    %c0_0 = arith.constant 0 : index
    %0 = vector.load %arg1[%c0, %c0_0] : memref<16x32xf32, #tpu.memory_space<vmem>>, vector<16x32xf32>
    %c0_1 = arith.constant 0 : index
    %c0_2 = arith.constant 0 : index
    %1 = vector.load %arg4[%c0_1, %c0_2] : memref<32x96xf32, #tpu.memory_space<vmem>>, vector<32x96xf32>
    %c0_3 = arith.constant 0 : index
    %c0_4 = arith.constant 0 : index
    %2 = vector.load %arg5[%c0_3, %c0_4] : memref<1x96xf32, #tpu.memory_space<vmem>>, vector<1x96xf32>
    %c0_5 = arith.constant 0 : index
    %c0_6 = arith.constant 0 : index
    %3 = vector.load %arg2[%c0_5, %c0_6] : memref<16x16xf32, #tpu.memory_space<vmem>>, vector<16x16xf32>
    %cst = arith.constant dense<0.000000e+00> : vector<16x96xf32>
    %4 = tpu.matmul %0, %1, %cst {dimension_numbers = #tpu.dot_dimension_numbers<[1], [0], [0], [1], [0, 0, 1, 1], [], []>} : vector<16x32xf32>, vector<32x96xf32>, vector<16x96xf32> -> vector<16x96xf32>
    %5 = vector.broadcast %2 : vector<1x96xf32> to vector<16x96xf32>
    %6 = arith.addf %4, %5 : vector<16x96xf32>
    %7 = vector.extract_strided_slice %6 {offsets = [0, 0], sizes = [16, 8], strides = [1, 1]} : vector<16x96xf32> to vector<16x8xf32>
    %8 = vector.extract_strided_slice %6 {offsets = [0, 32], sizes = [16, 8], strides = [1, 1]} : vector<16x96xf32> to vector<16x8xf32>
    %9 = vector.extract_strided_slice %6 {offsets = [0, 64], sizes = [16, 8], strides = [1, 1]} : vector<16x96xf32> to vector<16x8xf32>
    %cst_7 = arith.constant dense<0.000000e+00> : vector<16x16xf32>
    %10 = tpu.matmul %7, %8, %cst_7 {dimension_numbers = #tpu.dot_dimension_numbers<[1], [1], [0], [0], [0, 0, 1, 0], [], []>} : vector<16x8xf32>, vector<16x8xf32>, vector<16x16xf32> -> vector<16x16xf32>
    %11 = arith.addf %10, %3 : vector<16x16xf32>
    %cst_8 = arith.constant dense<0xFF800000> : vector<16xf32>
    %12 = vector.multi_reduction <maximumf>, %11, %cst_8 [1] : vector<16x16xf32> to vector<16xf32>
    %13 = vector.shape_cast %12 : vector<16xf32> to vector<16x1xf32>
    %14 = vector.broadcast %13 : vector<16x1xf32> to vector<16x16xf32>
    %15 = arith.subf %11, %14 : vector<16x16xf32>
    %16 = math.exp %15 : vector<16x16xf32>
    %cst_9 = arith.constant dense<0.000000e+00> : vector<16xf32>
    %17 = vector.multi_reduction <add>, %16, %cst_9 [1] : vector<16x16xf32> to vector<16xf32>
    %18 = vector.shape_cast %17 : vector<16xf32> to vector<16x1xf32>
    %cst_10 = arith.constant dense<0.000000e+00> : vector<16x8xf32>
    %19 = tpu.matmul %16, %9, %cst_10 {dimension_numbers = #tpu.dot_dimension_numbers<[1], [0], [0], [1], [0, 0, 1, 1], [], []>} : vector<16x16xf32>, vector<16x8xf32>, vector<16x8xf32> -> vector<16x8xf32>
    %20 = vector.broadcast %18 : vector<16x1xf32> to vector<16x8xf32>
    %21 = arith.divf %19, %20 : vector<16x8xf32>
    %22 = vector.extract_strided_slice %6 {offsets = [0, 8], sizes = [16, 8], strides = [1, 1]} : vector<16x96xf32> to vector<16x8xf32>
    %23 = vector.extract_strided_slice %6 {offsets = [0, 40], sizes = [16, 8], strides = [1, 1]} : vector<16x96xf32> to vector<16x8xf32>
    %24 = vector.extract_strided_slice %6 {offsets = [0, 72], sizes = [16, 8], strides = [1, 1]} : vector<16x96xf32> to vector<16x8xf32>
    %cst_11 = arith.constant dense<0.000000e+00> : vector<16x16xf32>
    %25 = tpu.matmul %22, %23, %cst_11 {dimension_numbers = #tpu.dot_dimension_numbers<[1], [1], [0], [0], [0, 0, 1, 0], [], []>} : vector<16x8xf32>, vector<16x8xf32>, vector<16x16xf32> -> vector<16x16xf32>
    %26 = arith.addf %25, %3 : vector<16x16xf32>
    %cst_12 = arith.constant dense<0xFF800000> : vector<16xf32>
    %27 = vector.multi_reduction <maximumf>, %26, %cst_12 [1] : vector<16x16xf32> to vector<16xf32>
    %28 = vector.shape_cast %27 : vector<16xf32> to vector<16x1xf32>
    %29 = vector.broadcast %28 : vector<16x1xf32> to vector<16x16xf32>
    %30 = arith.subf %26, %29 : vector<16x16xf32>
    %31 = math.exp %30 : vector<16x16xf32>
    %cst_13 = arith.constant dense<0.000000e+00> : vector<16xf32>
    %32 = vector.multi_reduction <add>, %31, %cst_13 [1] : vector<16x16xf32> to vector<16xf32>
    %33 = vector.shape_cast %32 : vector<16xf32> to vector<16x1xf32>
    %cst_14 = arith.constant dense<0.000000e+00> : vector<16x8xf32>
    %34 = tpu.matmul %31, %24, %cst_14 {dimension_numbers = #tpu.dot_dimension_numbers<[1], [0], [0], [1], [0, 0, 1, 1], [], []>} : vector<16x16xf32>, vector<16x8xf32>, vector<16x8xf32> -> vector<16x8xf32>
    %35 = vector.broadcast %33 : vector<16x1xf32> to vector<16x8xf32>
    %36 = arith.divf %34, %35 : vector<16x8xf32>
    %37 = vector.extract_strided_slice %6 {offsets = [0, 16], sizes = [16, 8], strides = [1, 1]} : vector<16x96xf32> to vector<16x8xf32>
    %38 = vector.extract_strided_slice %6 {offsets = [0, 48], sizes = [16, 8], strides = [1, 1]} : vector<16x96xf32> to vector<16x8xf32>
    %39 = vector.extract_strided_slice %6 {offsets = [0, 80], sizes = [16, 8], strides = [1, 1]} : vector<16x96xf32> to vector<16x8xf32>
    %cst_15 = arith.constant dense<0.000000e+00> : vector<16x16xf32>
    %40 = tpu.matmul %37, %38, %cst_15 {dimension_numbers = #tpu.dot_dimension_numbers<[1], [1], [0], [0], [0, 0, 1, 0], [], []>} : vector<16x8xf32>, vector<16x8xf32>, vector<16x16xf32> -> vector<16x16xf32>
    %41 = arith.addf %40, %3 : vector<16x16xf32>
    %cst_16 = arith.constant dense<0xFF800000> : vector<16xf32>
    %42 = vector.multi_reduction <maximumf>, %41, %cst_16 [1] : vector<16x16xf32> to vector<16xf32>
    %43 = vector.shape_cast %42 : vector<16xf32> to vector<16x1xf32>
    %44 = vector.broadcast %43 : vector<16x1xf32> to vector<16x16xf32>
    %45 = arith.subf %41, %44 : vector<16x16xf32>
    %46 = math.exp %45 : vector<16x16xf32>
    %cst_17 = arith.constant dense<0.000000e+00> : vector<16xf32>
    %47 = vector.multi_reduction <add>, %46, %cst_17 [1] : vector<16x16xf32> to vector<16xf32>
    %48 = vector.shape_cast %47 : vector<16xf32> to vector<16x1xf32>
    %cst_18 = arith.constant dense<0.000000e+00> : vector<16x8xf32>
    %49 = tpu.matmul %46, %39, %cst_18 {dimension_numbers = #tpu.dot_dimension_numbers<[1], [0], [0], [1], [0, 0, 1, 1], [], []>} : vector<16x16xf32>, vector<16x8xf32>, vector<16x8xf32> -> vector<16x8xf32>
    %50 = vector.broadcast %48 : vector<16x1xf32> to vector<16x8xf32>
    %51 = arith.divf %49, %50 : vector<16x8xf32>
    %52 = vector.extract_strided_slice %6 {offsets = [0, 24], sizes = [16, 8], strides = [1, 1]} : vector<16x96xf32> to vector<16x8xf32>
    %53 = vector.extract_strided_slice %6 {offsets = [0, 56], sizes = [16, 8], strides = [1, 1]} : vector<16x96xf32> to vector<16x8xf32>
    %54 = vector.extract_strided_slice %6 {offsets = [0, 88], sizes = [16, 8], strides = [1, 1]} : vector<16x96xf32> to vector<16x8xf32>
    %cst_19 = arith.constant dense<0.000000e+00> : vector<16x16xf32>
    %55 = tpu.matmul %52, %53, %cst_19 {dimension_numbers = #tpu.dot_dimension_numbers<[1], [1], [0], [0], [0, 0, 1, 0], [], []>} : vector<16x8xf32>, vector<16x8xf32>, vector<16x16xf32> -> vector<16x16xf32>
    %56 = arith.addf %55, %3 : vector<16x16xf32>
    %cst_20 = arith.constant dense<0xFF800000> : vector<16xf32>
    %57 = vector.multi_reduction <maximumf>, %56, %cst_20 [1] : vector<16x16xf32> to vector<16xf32>
    %58 = vector.shape_cast %57 : vector<16xf32> to vector<16x1xf32>
    %59 = vector.broadcast %58 : vector<16x1xf32> to vector<16x16xf32>
    %60 = arith.subf %56, %59 : vector<16x16xf32>
    %61 = math.exp %60 : vector<16x16xf32>
    %cst_21 = arith.constant dense<0.000000e+00> : vector<16xf32>
    %62 = vector.multi_reduction <add>, %61, %cst_21 [1] : vector<16x16xf32> to vector<16xf32>
    %63 = vector.shape_cast %62 : vector<16xf32> to vector<16x1xf32>
    %cst_22 = arith.constant dense<0.000000e+00> : vector<16x8xf32>
    %64 = tpu.matmul %61, %54, %cst_22 {dimension_numbers = #tpu.dot_dimension_numbers<[1], [0], [0], [1], [0, 0, 1, 1], [], []>} : vector<16x16xf32>, vector<16x8xf32>, vector<16x8xf32> -> vector<16x8xf32>
    %65 = vector.broadcast %63 : vector<16x1xf32> to vector<16x8xf32>
    %66 = arith.divf %64, %65 : vector<16x8xf32>
    %67 = tpu.concatenate %21, %36, %51, %66 in 1 : vector<16x8xf32>, vector<16x8xf32>, vector<16x8xf32>, vector<16x8xf32> -> vector<16x32xf32>
    %c0_23 = arith.constant 0 : index
    %c0_24 = arith.constant 0 : index
    %68 = vector.load %arg6[%c0_23, %c0_24] : memref<32x96xf32, #tpu.memory_space<vmem>>, vector<32x96xf32>
    %c0_25 = arith.constant 0 : index
    %c0_26 = arith.constant 0 : index
    %69 = vector.load %arg7[%c0_25, %c0_26] : memref<1x96xf32, #tpu.memory_space<vmem>>, vector<1x96xf32>
    %c0_27 = arith.constant 0 : index
    %c0_28 = arith.constant 0 : index
    %70 = vector.load %arg3[%c0_27, %c0_28] : memref<16x16xf32, #tpu.memory_space<vmem>>, vector<16x16xf32>
    %cst_29 = arith.constant dense<0.000000e+00> : vector<16x96xf32>
    %71 = tpu.matmul %67, %68, %cst_29 {dimension_numbers = #tpu.dot_dimension_numbers<[1], [0], [0], [1], [0, 0, 1, 1], [], []>} : vector<16x32xf32>, vector<32x96xf32>, vector<16x96xf32> -> vector<16x96xf32>
    %72 = vector.broadcast %69 : vector<1x96xf32> to vector<16x96xf32>
    %73 = arith.addf %71, %72 : vector<16x96xf32>
    %74 = vector.extract_strided_slice %73 {offsets = [0, 0], sizes = [16, 8], strides = [1, 1]} : vector<16x96xf32> to vector<16x8xf32>
    %75 = vector.extract_strided_slice %73 {offsets = [0, 32], sizes = [16, 8], strides = [1, 1]} : vector<16x96xf32> to vector<16x8xf32>
    %76 = vector.extract_strided_slice %73 {offsets = [0, 64], sizes = [16, 8], strides = [1, 1]} : vector<16x96xf32> to vector<16x8xf32>
    %cst_30 = arith.constant dense<0.000000e+00> : vector<16x16xf32>
    %77 = tpu.matmul %74, %75, %cst_30 {dimension_numbers = #tpu.dot_dimension_numbers<[1], [1], [0], [0], [0, 0, 1, 0], [], []>} : vector<16x8xf32>, vector<16x8xf32>, vector<16x16xf32> -> vector<16x16xf32>
    %78 = arith.addf %77, %70 : vector<16x16xf32>
    %cst_31 = arith.constant dense<0xFF800000> : vector<16xf32>
    %79 = vector.multi_reduction <maximumf>, %78, %cst_31 [1] : vector<16x16xf32> to vector<16xf32>
    %80 = vector.shape_cast %79 : vector<16xf32> to vector<16x1xf32>
    %81 = vector.broadcast %80 : vector<16x1xf32> to vector<16x16xf32>
    %82 = arith.subf %78, %81 : vector<16x16xf32>
    %83 = math.exp %82 : vector<16x16xf32>
    %cst_32 = arith.constant dense<0.000000e+00> : vector<16xf32>
    %84 = vector.multi_reduction <add>, %83, %cst_32 [1] : vector<16x16xf32> to vector<16xf32>
    %85 = vector.shape_cast %84 : vector<16xf32> to vector<16x1xf32>
    %cst_33 = arith.constant dense<0.000000e+00> : vector<16x8xf32>
    %86 = tpu.matmul %83, %76, %cst_33 {dimension_numbers = #tpu.dot_dimension_numbers<[1], [0], [0], [1], [0, 0, 1, 1], [], []>} : vector<16x16xf32>, vector<16x8xf32>, vector<16x8xf32> -> vector<16x8xf32>
    %87 = vector.broadcast %85 : vector<16x1xf32> to vector<16x8xf32>
    %88 = arith.divf %86, %87 : vector<16x8xf32>
    %89 = vector.extract_strided_slice %73 {offsets = [0, 8], sizes = [16, 8], strides = [1, 1]} : vector<16x96xf32> to vector<16x8xf32>
    %90 = vector.extract_strided_slice %73 {offsets = [0, 40], sizes = [16, 8], strides = [1, 1]} : vector<16x96xf32> to vector<16x8xf32>
    %91 = vector.extract_strided_slice %73 {offsets = [0, 72], sizes = [16, 8], strides = [1, 1]} : vector<16x96xf32> to vector<16x8xf32>
    %cst_34 = arith.constant dense<0.000000e+00> : vector<16x16xf32>
    %92 = tpu.matmul %89, %90, %cst_34 {dimension_numbers = #tpu.dot_dimension_numbers<[1], [1], [0], [0], [0, 0, 1, 0], [], []>} : vector<16x8xf32>, vector<16x8xf32>, vector<16x16xf32> -> vector<16x16xf32>
    %93 = arith.addf %92, %70 : vector<16x16xf32>
    %cst_35 = arith.constant dense<0xFF800000> : vector<16xf32>
    %94 = vector.multi_reduction <maximumf>, %93, %cst_35 [1] : vector<16x16xf32> to vector<16xf32>
    %95 = vector.shape_cast %94 : vector<16xf32> to vector<16x1xf32>
    %96 = vector.broadcast %95 : vector<16x1xf32> to vector<16x16xf32>
    %97 = arith.subf %93, %96 : vector<16x16xf32>
    %98 = math.exp %97 : vector<16x16xf32>
    %cst_36 = arith.constant dense<0.000000e+00> : vector<16xf32>
    %99 = vector.multi_reduction <add>, %98, %cst_36 [1] : vector<16x16xf32> to vector<16xf32>
    %100 = vector.shape_cast %99 : vector<16xf32> to vector<16x1xf32>
    %cst_37 = arith.constant dense<0.000000e+00> : vector<16x8xf32>
    %101 = tpu.matmul %98, %91, %cst_37 {dimension_numbers = #tpu.dot_dimension_numbers<[1], [0], [0], [1], [0, 0, 1, 1], [], []>} : vector<16x16xf32>, vector<16x8xf32>, vector<16x8xf32> -> vector<16x8xf32>
    %102 = vector.broadcast %100 : vector<16x1xf32> to vector<16x8xf32>
    %103 = arith.divf %101, %102 : vector<16x8xf32>
    %104 = vector.extract_strided_slice %73 {offsets = [0, 16], sizes = [16, 8], strides = [1, 1]} : vector<16x96xf32> to vector<16x8xf32>
    %105 = vector.extract_strided_slice %73 {offsets = [0, 48], sizes = [16, 8], strides = [1, 1]} : vector<16x96xf32> to vector<16x8xf32>
    %106 = vector.extract_strided_slice %73 {offsets = [0, 80], sizes = [16, 8], strides = [1, 1]} : vector<16x96xf32> to vector<16x8xf32>
    %cst_38 = arith.constant dense<0.000000e+00> : vector<16x16xf32>
    %107 = tpu.matmul %104, %105, %cst_38 {dimension_numbers = #tpu.dot_dimension_numbers<[1], [1], [0], [0], [0, 0, 1, 0], [], []>} : vector<16x8xf32>, vector<16x8xf32>, vector<16x16xf32> -> vector<16x16xf32>
    %108 = arith.addf %107, %70 : vector<16x16xf32>
    %cst_39 = arith.constant dense<0xFF800000> : vector<16xf32>
    %109 = vector.multi_reduction <maximumf>, %108, %cst_39 [1] : vector<16x16xf32> to vector<16xf32>
    %110 = vector.shape_cast %109 : vector<16xf32> to vector<16x1xf32>
    %111 = vector.broadcast %110 : vector<16x1xf32> to vector<16x16xf32>
    %112 = arith.subf %108, %111 : vector<16x16xf32>
    %113 = math.exp %112 : vector<16x16xf32>
    %cst_40 = arith.constant dense<0.000000e+00> : vector<16xf32>
    %114 = vector.multi_reduction <add>, %113, %cst_40 [1] : vector<16x16xf32> to vector<16xf32>
    %115 = vector.shape_cast %114 : vector<16xf32> to vector<16x1xf32>
    %cst_41 = arith.constant dense<0.000000e+00> : vector<16x8xf32>
    %116 = tpu.matmul %113, %106, %cst_41 {dimension_numbers = #tpu.dot_dimension_numbers<[1], [0], [0], [1], [0, 0, 1, 1], [], []>} : vector<16x16xf32>, vector<16x8xf32>, vector<16x8xf32> -> vector<16x8xf32>
    %117 = vector.broadcast %115 : vector<16x1xf32> to vector<16x8xf32>
    %118 = arith.divf %116, %117 : vector<16x8xf32>
    %119 = vector.extract_strided_slice %73 {offsets = [0, 24], sizes = [16, 8], strides = [1, 1]} : vector<16x96xf32> to vector<16x8xf32>
    %120 = vector.extract_strided_slice %73 {offsets = [0, 56], sizes = [16, 8], strides = [1, 1]} : vector<16x96xf32> to vector<16x8xf32>
    %121 = vector.extract_strided_slice %73 {offsets = [0, 88], sizes = [16, 8], strides = [1, 1]} : vector<16x96xf32> to vector<16x8xf32>
    %cst_42 = arith.constant dense<0.000000e+00> : vector<16x16xf32>
    %122 = tpu.matmul %119, %120, %cst_42 {dimension_numbers = #tpu.dot_dimension_numbers<[1], [1], [0], [0], [0, 0, 1, 0], [], []>} : vector<16x8xf32>, vector<16x8xf32>, vector<16x16xf32> -> vector<16x16xf32>
    %123 = arith.addf %122, %70 : vector<16x16xf32>
    %cst_43 = arith.constant dense<0xFF800000> : vector<16xf32>
    %124 = vector.multi_reduction <maximumf>, %123, %cst_43 [1] : vector<16x16xf32> to vector<16xf32>
    %125 = vector.shape_cast %124 : vector<16xf32> to vector<16x1xf32>
    %126 = vector.broadcast %125 : vector<16x1xf32> to vector<16x16xf32>
    %127 = arith.subf %123, %126 : vector<16x16xf32>
    %128 = math.exp %127 : vector<16x16xf32>
    %cst_44 = arith.constant dense<0.000000e+00> : vector<16xf32>
    %129 = vector.multi_reduction <add>, %128, %cst_44 [1] : vector<16x16xf32> to vector<16xf32>
    %130 = vector.shape_cast %129 : vector<16xf32> to vector<16x1xf32>
    %cst_45 = arith.constant dense<0.000000e+00> : vector<16x8xf32>
    %131 = tpu.matmul %128, %121, %cst_45 {dimension_numbers = #tpu.dot_dimension_numbers<[1], [0], [0], [1], [0, 0, 1, 1], [], []>} : vector<16x16xf32>, vector<16x8xf32>, vector<16x8xf32> -> vector<16x8xf32>
    %132 = vector.broadcast %130 : vector<16x1xf32> to vector<16x8xf32>
    %133 = arith.divf %131, %132 : vector<16x8xf32>
    %134 = tpu.concatenate %88, %103, %118, %133 in 1 : vector<16x8xf32>, vector<16x8xf32>, vector<16x8xf32>, vector<16x8xf32> -> vector<16x32xf32>
    %c0_46 = arith.constant 0 : index
    %c0_47 = arith.constant 0 : index
    %135 = vector.load %arg8[%c0_46, %c0_47] : memref<32x32xf32, #tpu.memory_space<vmem>>, vector<32x32xf32>
    %cst_48 = arith.constant dense<0.000000e+00> : vector<16x32xf32>
    %136 = tpu.matmul %134, %135, %cst_48 {dimension_numbers = #tpu.dot_dimension_numbers<[1], [0], [0], [1], [0, 0, 1, 1], [], []>} : vector<16x32xf32>, vector<32x32xf32>, vector<16x32xf32> -> vector<16x32xf32>
    %c0_49 = arith.constant 0 : index
    %c0_50 = arith.constant 0 : index
    %137 = vector.load %arg9[%c0_49, %c0_50] : memref<1x32xf32, #tpu.memory_space<vmem>>, vector<1x32xf32>
    %138 = vector.broadcast %137 : vector<1x32xf32> to vector<16x32xf32>
    %139 = arith.addf %136, %138 : vector<16x32xf32>
    %c0_51 = arith.constant 0 : index
    %c0_52 = arith.constant 0 : index
    %140 = vector.load %arg10[%c0_51, %c0_52] : memref<16x32xf32, #tpu.memory_space<vmem>>, vector<16x32xf32>
    tpu.vector_store %arg10[%c0_51, %c0_52], %139 {strides = array<i32>} : memref<16x32xf32, #tpu.memory_space<vmem>>, vector<16x32xf32>,
    return
  }
  func.func @transform_0(%arg0: i32) -> (i32, i32) {
    %c0_i32 = arith.constant 0 : i32
    %c0_i32_0 = arith.constant 0 : i32
    return %arg0, %c0_i32 : i32, i32
  }
  func.func @transform_1(%arg0: i32) -> (i32, i32) {
    %c0_i32 = arith.constant 0 : i32
    %c0_i32_0 = arith.constant 0 : i32
    %c0_i32_1 = arith.constant 0 : i32
    return %c0_i32, %c0_i32_0 : i32, i32
  }
  func.func @transform_2(%arg0: i32) -> (i32, i32) {
    %c0_i32 = arith.constant 0 : i32
    %c0_i32_0 = arith.constant 0 : i32
    %c0_i32_1 = arith.constant 0 : i32
    return %c0_i32, %c0_i32_0 : i32, i32
  }
  func.func @transform_3(%arg0: i32) -> (i32, i32) {
    %c0_i32 = arith.constant 0 : i32
    %c0_i32_0 = arith.constant 0 : i32
    %c0_i32_1 = arith.constant 0 : i32
    return %c0_i32, %c0_i32_0 : i32, i32
  }
  func.func @transform_4(%arg0: i32) -> (i32, i32) {
    %c0_i32 = arith.constant 0 : i32
    %c0_i32_0 = arith.constant 0 : i32
    %c0_i32_1 = arith.constant 0 : i32
    return %c0_i32, %c0_i32_0 : i32, i32
  }
  func.func @transform_5(%arg0: i32) -> (i32, i32) {
    %c0_i32 = arith.constant 0 : i32
    %c0_i32_0 = arith.constant 0 : i32
    %c0_i32_1 = arith.constant 0 : i32
    return %c0_i32, %c0_i32_0 : i32, i32
  }
  func.func @transform_6(%arg0: i32) -> (i32, i32) {
    %c0_i32 = arith.constant 0 : i32
    %c0_i32_0 = arith.constant 0 : i32
    %c0_i32_1 = arith.constant 0 : i32
    return %c0_i32, %c0_i32_0 : i32, i32
  }
  func.func @transform_7(%arg0: i32) -> (i32, i32) {
    %c0_i32 = arith.constant 0 : i32
    %c0_i32_0 = arith.constant 0 : i32
    %c0_i32_1 = arith.constant 0 : i32
    return %c0_i32, %c0_i32_0 : i32, i32
  }
  func.func @transform_8(%arg0: i32) -> (i32, i32) {
    %c0_i32 = arith.constant 0 : i32
    %c0_i32_0 = arith.constant 0 : i32
    %c0_i32_1 = arith.constant 0 : i32
    return %c0_i32, %c0_i32_0 : i32, i32
  }
  func.func @transform_9(%arg0: i32) -> (i32, i32) {
    %c0_i32 = arith.constant 0 : i32
    %c0_i32_0 = arith.constant 0 : i32
    return %arg0, %c0_i32 : i32, i32
  }
}

</mosaic_0001>

<bundles_post_ra>
// kernel: tpu_custom_call.1
= control target key start
LH: loop header
LB: loop body
LE: loop exit
PB: predicated region body
PF: predicated region fallthrough
CT: control target
= control target key end

     0   :  { %14 = vsyncpa [#allocation3], 0  ;;  %s3285_s0 = inlined_call_operand.hbm [shape: f32[16,32], index: 0, kind: input, shape index: {}]   ;;  %s3286_s1 = inlined_call_operand.hbm [shape: f32[16,16], index: 1, kind: input, shape index: {}]   ;;  %s3287_s2 = inlined_call_operand.hbm [shape: f32[16,16], index: 2, kind: input, shape index: {}]   ;;  %s3288_s3 = inlined_call_operand.hbm [shape: f32[32,96], index: 3, kind: input, shape index: {}]   ;;  %s3289_s4 = inlined_call_operand.vmem [shape: f32[1,96], index: 4, kind: input, shape index: {}]   ;;  %s3290_s5 = inlined_call_operand.hbm [shape: f32[32,96], index: 5, kind: input, shape index: {}]   ;;  %s3291_s6 = inlined_call_operand.vmem [shape: f32[1,96], index: 6, kind: input, shape index: {}]   ;;  %s3292_s7 = inlined_call_operand.hbm [shape: f32[32,32], index: 7, kind: input, shape index: {}]   ;;  %s3293_s8 = inlined_call_operand.vmem [shape: f32[1,32], index: 8, kind: input, shape index: {}]   ;;  %s3294_s9 = inlined_call_operand.hbm [shape: f32[16,32], index: 9, kind: output, shape index: {}]  }
   0x1   :  { %15 = vsyncpa [#allocation6], 0 }
   0x2   :  { %16 = vsyncpa [#allocation9], 0 }
   0x3   :  { %17 = vsyncpa [#allocation12], 0 }
   0x4   :  { %18 = vsyncpa [#allocation4], 0  ;;  %s2797_s30 = smov [#allocation5]   ;;  %s2798_s11 = smov [#allocation8]  }
   0x5   :  { %s36_s10 = sshll.u32 %s2797_s30, 4  ;;  %s60_s12 = sshll.u32 %s2798_s11, 4  ;;  %s37_s10 = int_to_ptr.vmem [resolvable:$true] %s36_s10  ;;  %s2869_s12 = int_to_ptr.vmem [resolvable:$true] %s60_s12 }
   0x6   :  { %s2633_s15 = scalar_lea.hbm %s3286_s1, 256 }
   0x7   :  { %p2634_p0 = scmp.ne.s32.totalorder %s3286_s1, %s2633_s15  ;;  %p2637_p1 = scmp.lt.u32.totalorder %s2633_s15, %s3286_s1 }
   0x9   :  { %p2639_p2 = pnand %p2637_p1, %p2634_p0 }
   0xb   :  { %2642 = shalt.err (!%p2639_p2)
}
   0xc   :  { %s2643_s20 = scalar_lea.vmem %s37_s10, 256  ;;  %p2648_p4 = scmp.lt.s32.totalorder %s37_s10, %s37_s10 }
   0xd   :  { %p2644_p3 = scmp.ne.s32.totalorder %s37_s10, %s2643_s20  ;;  %p2649_p5 = scmp.lt.s32.totalorder %s2643_s20, %s2643_s20 }
   0xf   :  { %p2650_p6 = por %p2649_p5, %p2648_p4 }
  0x11   :  { %p2651_p7 = pnand %p2650_p6, %p2644_p3 }
  0x13   :  { %2654 = shalt.err (!%p2651_p7)
}
  0x14   :  { %s2799_s21 = smov 128   ;;  %s2800_s22 = smov 8  }
  0x15   :  { %42 = dma.hbm_to_vmem [thread:$0]  %s3286_s1, 256, %s37_s10, [#allocation6], %s2799_s21, %s2799_s21, %s2800_s22  }
  0x16   :  { %s2655_s27 = scalar_lea.hbm %s3288_s3, 512 }
  0x17   :  { %p2656_p8 = scmp.ne.s32.totalorder %s3288_s3, %s2655_s27  ;;  %p2659_p9 = scmp.lt.u32.totalorder %s2655_s27, %s3288_s3 }
  0x19   :  { %p2661_p10 = pnand %p2659_p9, %p2656_p8 }
  0x1b   :  { %2664 = shalt.err (!%p2661_p10)
}
  0x1c   :  { %s2665_s13 = scalar_lea.vmem %s2869_s12, 512  ;;  %p2670_p12 = scmp.lt.s32.totalorder %s2869_s12, %s2869_s12 }
  0x1d   :  { %p2666_p11 = scmp.ne.s32.totalorder %s2869_s12, %s2665_s13  ;;  %p2671_p13 = scmp.lt.s32.totalorder %s2665_s13, %s2665_s13 }
  0x1f   :  { %p2672_p0 = por %p2671_p13, %p2670_p12 }
  0x21   :  { %p2673_p1 = pnand %p2672_p0, %p2666_p11 }
  0x23   :  { %2676 = shalt.err (!%p2673_p1)
}
  0x24   :  { %66 = dma.hbm_to_vmem [thread:$0]  %s3288_s3, 512, %s2869_s12, [#allocation9], %s2799_s21, %s2799_s21, %s2800_s22  }
  0x25   :  { %s2801_s14 = smov [#allocation2]   ;;  %s2802_s16 = smov [#allocation7]  }
  0x26   :  { %s24_s15 = sshll.u32 %s2801_s14, 4  ;;  %s48_s17 = sshll.u32 %s2802_s16, 4  ;;  %s25_s15 = int_to_ptr.vmem [resolvable:$true] %s24_s15  ;;  %s2906_s17 = int_to_ptr.vmem [resolvable:$true] %s48_s17 }
  0x27   :  { %s2677_s20 = scalar_lea.hbm %s3285_s0, 256 }
  0x28   :  { %p2678_p2 = scmp.ne.s32.totalorder %s3285_s0, %s2677_s20  ;;  %p2681_p3 = scmp.lt.u32.totalorder %s2677_s20, %s3285_s0 }
  0x2a   :  { %p2683_p4 = pnand %p2681_p3, %p2678_p2 }
  0x2c   :  { %2686 = shalt.err (!%p2683_p4)
}
  0x2d   :  { %s2687_s3 = scalar_lea.vmem %s25_s15, 256  ;;  %p2692_p6 = scmp.lt.s32.totalorder %s25_s15, %s25_s15 }
  0x2e   :  { %p2688_p5 = scmp.ne.s32.totalorder %s25_s15, %s2687_s3  ;;  %p2693_p7 = scmp.lt.s32.totalorder %s2687_s3, %s2687_s3 }
  0x30   :  { %p2694_p8 = por %p2693_p7, %p2692_p6 }
  0x32   :  { %p2695_p9 = pnand %p2694_p8, %p2688_p5 }
  0x34   :  { %2698 = shalt.err (!%p2695_p9)
}
  0x35   :  { %30 = dma.hbm_to_vmem [thread:$0]  %s3285_s0, 256, %s25_s15, [#allocation3], %s2799_s21, %s2799_s21, %s2800_s22  }
  0x36   :  { %s2699_s30 = scalar_lea.hbm %s3287_s2, 256 }
  0x37   :  { %p2700_p10 = scmp.ne.s32.totalorder %s3287_s2, %s2699_s30  ;;  %p2703_p11 = scmp.lt.u32.totalorder %s2699_s30, %s3287_s2 }
  0x39   :  { %p2705_p12 = pnand %p2703_p11, %p2700_p10 }
  0x3b   :  { %2708 = shalt.err (!%p2705_p12)
}
  0x3c   :  { %s2709_s14 = scalar_lea.vmem %s2906_s17, 256  ;;  %p2714_p0 = scmp.lt.s32.totalorder %s2906_s17, %s2906_s17 }
  0x3d   :  { %p2710_p13 = scmp.ne.s32.totalorder %s2906_s17, %s2709_s14  ;;  %p2715_p1 = scmp.lt.s32.totalorder %s2709_s14, %s2709_s14 }
  0x3f   :  { %p2716_p2 = por %p2715_p1, %p2714_p0 }
  0x41   :  { %p2717_p3 = pnand %p2716_p2, %p2710_p13 }
  0x43   :  { %2720 = shalt.err (!%p2717_p3)
}
  0x44   :  { %54 = dma.hbm_to_vmem [thread:$0]  %s3287_s2, 256, %s2906_s17, [#allocation6], %s2799_s21, %s2799_s21, %s2800_s22  }
  0x45   :  { %s2803_s16 = smov [#allocation10]   ;;  %s2804_s19 = smov [#allocation11]  }
  0x46   :  { %s74_s18 = sshll.u32 %s2803_s16, 4  ;;  %s88_s20 = sshll.u32 %s2804_s19, 4  ;;  %s75_s18 = int_to_ptr.vmem [resolvable:$true] %s74_s18  ;;  %s2943_s20 = int_to_ptr.vmem [resolvable:$true] %s88_s20 }
  0x47   :  { %s2721_s25 = scalar_lea.hbm %s3290_s5, 512 }
  0x48   :  { %p2722_p4 = scmp.ne.s32.totalorder %s3290_s5, %s2721_s25  ;;  %p2725_p5 = scmp.lt.u32.totalorder %s2721_s25, %s3290_s5 }
  0x4a   :  { %p2727_p6 = pnand %p2725_p5, %p2722_p4 }
  0x4c   :  { %2730 = shalt.err (!%p2727_p6)
}
  0x4d   :  { %s2731_s2 = scalar_lea.vmem %s75_s18, 512  ;;  %p2736_p8 = scmp.lt.s32.totalorder %s75_s18, %s75_s18 }
  0x4e   :  { %p2732_p7 = scmp.ne.s32.totalorder %s75_s18, %s2731_s2  ;;  %p2737_p9 = scmp.lt.s32.totalorder %s2731_s2, %s2731_s2 }
  0x50   :  { %p2738_p10 = por %p2737_p9, %p2736_p8 }
  0x52   :  { %p2739_p11 = pnand %p2738_p10, %p2732_p7 }
  0x54   :  { %2742 = shalt.err (!%p2739_p11)
}
  0x55   :  { %80 = dma.hbm_to_vmem [thread:$0]  %s3290_s5, 512, %s75_s18, [#allocation9], %s2799_s21, %s2799_s21, %s2800_s22  }
  0x56   :  { %s2743_s11 = scalar_lea.hbm %s3292_s7, 512 }
  0x57   :  { %p2744_p12 = scmp.ne.s32.totalorder %s3292_s7, %s2743_s11  ;;  %p2747_p13 = scmp.lt.u32.totalorder %s2743_s11, %s3292_s7 }
  0x59   :  { %p2749_p0 = pnand %p2747_p13, %p2744_p12 }
  0x5b   :  { %2752 = shalt.err (!%p2749_p0)
}
  0x5c   :  { %s2753_s0 = scalar_lea.vmem %s2943_s20, 512  ;;  %p2758_p2 = scmp.lt.s32.totalorder %s2943_s20, %s2943_s20 }
  0x5d   :  { %p2754_p1 = scmp.ne.s32.totalorder %s2943_s20, %s2753_s0  ;;  %p2759_p3 = scmp.lt.s32.totalorder %s2753_s0, %s2753_s0 }
  0x5f   :  { %p2760_p4 = por %p2759_p3, %p2758_p2 }
  0x61   :  { %p2761_p5 = pnand %p2760_p4, %p2754_p1 }
  0x63   :  { %2764 = shalt.err (!%p2761_p5)
}
  0x64   :  { %94 = dma.hbm_to_vmem [thread:$0]  %s3292_s7, 512, %s2943_s20, [#allocation12], %s2799_s21, %s2799_s21, %s2800_s22  }
  0x65   :  { %2787 = dma.done.wait [#allocation3], 256  }
  0x66   :  { %2788 = vsyncadd [#allocation3], 4294967040 }
  0x67   :  { %2789 = dma.done.wait [#allocation6], 512  }
  0x68   :  { %2790 = vsyncadd [#allocation6], 4294966784 }
  0x69   :  { %2791 = dma.done.wait [#allocation9], 1024  }
  0x6a   :  { %2792 = vsyncadd [#allocation9], 4294966272 }
  0x6b   :  { %2793 = dma.done.wait [#allocation12], 512  }
  0x6c   :  { %2794 = vsyncadd [#allocation12], 4294966784  ;;  %vm130_vm0 = vcmask 261120   ;;  %v117_v0 = vld [vmem:[#allocation8] sm:$0xff]  ;;  %v118_v1 = vld [vmem:[#allocation8 + $0x8] sm:$0xff]  ;;  %vm218_vm1 = vcmask 64512  }
  0x6d   :  { %v119_v2 = vld [vmem:[#allocation8 + $0x10] sm:$0xff]  ;;  %v2363_v3 = vpack.c.bf16 %v118_v1, %v117_v0  ;;  %v120_v4 = vld [vmem:[#allocation8 + $0x18] sm:$0xff]  ;;  %s2805_s18 = smov 96   ;;  %vm2999_vm2 = vmpackc.low %vm218_vm1, %vm218_vm1  ;;  %vm302_vm3 = vcmask 130048   ;;  %s2807_s19 = smov 88   ;;  %vm1040_vm4 = vcmask 195584  }
  0x6e   :  { %v115_v5 = vld [vmem:[#allocation2] sm:$0xff]  ;;  %v2367_v6 = vpack.c.bf16 %v120_v4, %v119_v2  ;;  %v116_v7 = vld [vmem:[#allocation2 + $0x8] sm:$0xff]  ;;  %v3009_v19 = vld [vmem:[#allocation5 + $0x8] sm:$0xff]  ;;  %s2808_s20 = smov 120   ;;  %s2809_s23 = smov 48  }
  0x6f   :  { %2226 = vmatprep.mubr.msk.f32.mxu0 %vm130_vm0, %v115_v5  ;;  %2364 = vmatprep.subr.bf16.mxu0 %v2363_v3  ;;  %v2079_v8 = vld [vmem:[%s3289_s4] ss:$0 sm:$0xff]  ;;  %v3011_v20 = vld [vmem:[#allocation5] sm:$0xff]  ;;  %s2806_s4 = smov 64   ;;  %s2810_s24 = smov 56  }
  0x70   :  { %2366 = vmatpush3.bf16.msra.mxu0 %v2363_v3  ;;  %s2811_s25 = smov 72   ;;  %s2812_s26 = smov 80  }
  0x71   :  { %2368 = vmatprep.subr.bf16.mxu0 %v2367_v6  ;;  %s2813_s3 = smov 112   ;;  %s2814_s12 = smov 104  }
  0x72   :  { %s2815_s27 = smov 40   ;;  %s2816_s2 = smov 16  }
  0x73   :  { %s2817_s17 = smov 24   ;;  %s2818_s11 = smov [#allocation13]  }
  0x74   :  { %2370 = vmatpush3.bf16.msra.mxu0 %v2367_v6  ;;  %s2064_s13 = sshll.u32 %s2818_s11, 4  ;;  %s2065_s13 = int_to_ptr.vmem [resolvable:$true] %s2064_s13 }
  0x75   :  { %s2765_s1 = scalar_lea.vmem %s2065_s13, 256  ;;  %p2770_p7 = scmp.lt.s32.totalorder %s2065_s13, %s2065_s13 }
  0x76   :  { %p2766_p6 = scmp.ne.s32.totalorder %s2065_s13, %s2765_s1  ;;  %p2771_p8 = scmp.lt.s32.totalorder %s2765_s1, %s2765_s1 }
  0x77   :  { %2227 = vmatmul.mubr.msk.f32.vlgmr.msra.gmra.mrb[0].mxu0 %vm130_vm0, %v116_v7 }
  0x78   :  { %p2772_p9 = por %p2771_p8, %p2770_p7 }
  0x7a   :  { %p2773_p10 = pnand %p2772_p9, %p2766_p6 }
 0x14a   :  { %v2228_v9 = vpop.f32.mrb[0].mxu0 }
 0x14b   :  { %v2985_v10 = vadd.f32 %v2228_v9, %v2079_v8  ;;  %v203_v11 = vpop.f32.mrb[1].mxu0 }
 0x14c   :  { %v2987_v12 = vadd.f32 %v2079_v8, %v203_v11 }
 0x14e   :  { %2233 = vmatprep.mubr.msk.f32.mxu1 %vm218_vm1, %v2987_v12  ;;  %v2993_v13 = vpack.i.bf16 %v2985_v10, %v2987_v12 }
 0x150   :  { %2490 = vrot.lane.b32.xlu0 %v2993_v13, %s2805_s18 }
 0x1c2   :  { %v2491_v14 = vpop.permute.xlu0 %2490 }
 0x1c3   :  { %v2493_v15 = vunpack.i.h.bf16 %v2491_v14  ;;  %v2492_v16 = vunpack.i.l.bf16 %v2491_v14 }
 0x1c5   :  { %v2371_v18 = vpack.c.bf16 %v2493_v15, %v2492_v16 }
 0x1c7   :  { %2373 = vmatprep.subr.msk.bf16.mxu1 %vm2999_vm2, %v2371_v18 }
 0x1c8   :  { %2376 = vmatpush3.bf16.xpose.msk.msra.mxu1 %vm2999_vm2, %v2371_v18 }
 0x1cf   :  { %2234 = vmatmul.mubr.msk.f32.vlgmr.msra.gmra.mrb[0].mxu1 %vm218_vm1, %v2985_v10 }
 0x2a2   :  { %v2235_v21 = vpop.f32.mrb[0].mxu1 }
 0x2a3   :  { %v299_v22 = vadd.f32 %v2235_v21, %v3009_v19  ;;  %v293_v23 = vpop.f32.mrb[1].mxu1 }
 0x2a4   :  { %v294_v24 = vadd.f32 %v293_v23, %v3011_v20 }
 0x2a5   :  { %v306_v25 = vsel %vm302_vm3, %v299_v22, -inf }
 0x2a6   :  { %307 = vmax.xlane.f32.xlu1 %v306_v25  ;;  %v303_v26 = vsel %vm302_vm3, %v294_v24, -inf }
 0x2a7   :  { %304 = vmax.xlane.f32.xlu0 %v303_v26 }
 0x2b7   :  { %2495 = vrot.lane.b32.xlu1 %v2993_v13, %s2806_s4 }
 0x2bb   :  { %2500 = vrot.lane.b32.xlu1 %v2993_v13, %s2807_s19 }
 0x2bf   :  { %412 = vrot.lane.b32.xlu1 %v2987_v12, %s2808_s20 }
 0x2c3   :  { %414 = vrot.lane.b32.xlu1 %v2985_v10, %s2808_s20 }
 0x333   :  { %v308_v27 = vpop.xlane.xlu1 %307 }
 0x334   :  { %v310_v28 = vsub.f32 %v299_v22, %v308_v27  ;;  %v305_v29 = vpop.xlane.xlu0 %304 }
 0x335   :  { %v309_v30 = vsub.f32 %v294_v24, %v305_v29 }
 0x336   :  { %v313_v31 = vmul.f32 1.442695, %v310_v28 }
 0x337   :  { %v311_v32 = vmul.f32 1.442695, %v309_v30  ;;  %v2496_v33 = vpop.permute.xlu1 %2495 }
 0x338   :  { %v2498_v34 = vunpack.i.h.bf16 %v2496_v33  ;;  %v2497_v35 = vunpack.i.l.bf16 %v2496_v33 }
 0x339   :  { %2569 = vpow2.f32 %v311_v32 }
 0x33a   :  { %2571 = vpow2.f32 %v313_v31  ;;  %v2377_v36 = vpack.c.bf16 %v2498_v34, %v2497_v35 }
 0x33b   :  { %v2501_v37 = vpop.permute.xlu1 %2500 }
 0x33c   :  { %v2503_v38 = vunpack.i.h.bf16 %v2501_v37  ;;  %v2502_v39 = vunpack.i.l.bf16 %v2501_v37  ;;  %2378 = vmatprep.subr.bf16.mxu1 %v2377_v36 }
 0x33d   :  { %2380 = vmatpush3.bf16.msra.mxu1 %v2377_v36 }
 0x33e   :  { %v2381_v40 = vpack.c.bf16 %v2503_v38, %v2502_v39 }
 0x33f   :  { %v413_v43 = vpop.permute.xlu1 %412 }
 0x340   :  { %2383 = vmatprep.subr.msk.bf16.mxu1 %vm2999_vm2, %v2381_v40 }
 0x343   :  { %v3027_v41 = vpop.eup %2569  ;;  %v415_v44 = vpop.permute.xlu1 %414 }
 0x344   :  { %v3029_v42 = vpop.eup %2571  ;;  %2240 = vmatprep.mubr.msk.f32.mxu1 %vm302_vm3, %v3027_v41 }
 0x345   :  { %2241 = vmatmul.mubr.msk.f32.vlgmr.msra.gmra.mrb[2].mxu1 %vm302_vm3, %v3029_v42 }
 0x346   :  { %2386 = vmatpush3.bf16.xpose.msk.msra.mxu1 %vm2999_vm2, %v2381_v40  ;;  %2247 = vmatprep.mubr.msk.f32.mxu1 %vm218_vm1, %v413_v43 }
 0x34d   :  { %2248 = vmatmul.mubr.msk.f32.vlgmr.msra.gmra.mrb[4].mxu1 %vm218_vm1, %v415_v44 }
 0x418   :  { %v3039_v45 = vpop.f32.mrb[2].mxu1 }
 0x419   :  { %v3041_v46 = vpop.f32.mrb[3].mxu1 }
 0x420   :  { %v2249_v47 = vpop.f32.mrb[4].mxu1 }
 0x421   :  { %v500_v48 = vadd.f32 %v2249_v47, %v3009_v19  ;;  %v494_v49 = vpop.f32.mrb[5].mxu1 }
 0x422   :  { %v495_v50 = vadd.f32 %v494_v49, %v3011_v20 }
 0x423   :  { %v506_v51 = vsel %vm302_vm3, %v500_v48, -inf }
 0x424   :  { %507 = vmax.xlane.f32.xlu0 %v506_v51  ;;  %v503_v52 = vsel %vm302_vm3, %v495_v50, -inf }
 0x425   :  { %504 = vmax.xlane.f32.xlu1 %v503_v52 }
 0x436   :  { %2515 = vrot.lane.b32.xlu1 %v2993_v13, %s2809_s23 }
 0x43a   :  { %2505 = vrot.lane.b32.xlu0 %v2993_v13, %s2810_s24  ;;  %2520 = vrot.lane.b32.xlu1 %v2993_v13, %s2811_s25 }
 0x43e   :  { %2510 = vrot.lane.b32.xlu0 %v2993_v13, %s2812_s26 }
 0x442   :  { %612 = vrot.lane.b32.xlu0 %v2987_v12, %s2813_s3 }
 0x446   :  { %614 = vrot.lane.b32.xlu0 %v2985_v10, %s2813_s3 }
 0x4b1   :  { %v508_v53 = vpop.xlane.xlu0 %507 }
 0x4b2   :  { %v510_v54 = vsub.f32 %v500_v48, %v508_v53  ;;  %v505_v55 = vpop.xlane.xlu1 %504 }
 0x4b3   :  { %v509_v56 = vsub.f32 %v495_v50, %v505_v55 }
 0x4b4   :  { %v513_v57 = vmul.f32 1.442695, %v510_v54 }
 0x4b5   :  { %v511_v58 = vmul.f32 1.442695, %v509_v56  ;;  %v2506_v59 = vpop.permute.xlu0 %2505 }
 0x4b6   :  { %v2508_v60 = vunpack.i.h.bf16 %v2506_v59  ;;  %v2507_v61 = vunpack.i.l.bf16 %v2506_v59  ;;  %v2516_v62 = vpop.permute.xlu1 %2515 }
 0x4b7   :  { %2573 = vpow2.f32 %v511_v58  ;;  %v2518_v63 = vunpack.i.h.bf16 %v2516_v62  ;;  %v2517_v0 = vunpack.i.l.bf16 %v2516_v62 }
 0x4b8   :  { %2575 = vpow2.f32 %v513_v57  ;;  %v2387_v1 = vpack.c.bf16 %v2508_v60, %v2507_v61 }
 0x4b9   :  { %v2397_v2 = vpack.c.bf16 %v2518_v63, %v2517_v0  ;;  %v2511_v3 = vpop.permute.xlu0 %2510 }
 0x4ba   :  { %v2513_v4 = vunpack.i.h.bf16 %v2511_v3  ;;  %v2512_v5 = vunpack.i.l.bf16 %v2511_v3  ;;  %2388 = vmatprep.subr.bf16.mxu0 %v2387_v1  ;;  %v2521_v6 = vpop.permute.xlu1 %2520  ;;  %v315_v3 = vsel %vm302_vm3, %v3027_v41, 0.0 }
 0x4bb   :  { %v2523_v7 = vunpack.i.h.bf16 %v2521_v6  ;;  %v2522_v8 = vunpack.i.l.bf16 %v2521_v6  ;;  %2390 = vmatpush3.bf16.msra.mxu0 %v2387_v1  ;;  %2398 = vmatprep.subr.bf16.mxu1 %v2397_v2 }
 0x4bc   :  { %v2391_v9 = vpack.c.bf16 %v2513_v4, %v2512_v5  ;;  %2400 = vmatpush3.bf16.msra.mxu1 %v2397_v2 }
 0x4bd   :  { %v2401_v11 = vpack.c.bf16 %v2523_v7, %v2522_v8  ;;  %v613_v16 = vpop.permute.xlu0 %612 }
 0x4be   :  { %2393 = vmatprep.subr.msk.bf16.mxu0 %vm2999_vm2, %v2391_v9 }
 0x4bf   :  { %2403 = vmatprep.subr.msk.bf16.mxu1 %vm2999_vm2, %v2401_v11 }
 0x4c1   :  { %v2574_v14 = vpop.eup %2573  ;;  %v615_v18 = vpop.permute.xlu0 %614 }
 0x4c2   :  { %v2576_v15 = vpop.eup %2575  ;;  %2254 = vmatprep.mubr.msk.f32.mxu0 %vm302_vm3, %v2574_v14 }
 0x4c3   :  { %2255 = vmatmul.mubr.msk.f32.vlgmr.msra.gmra.mrb[2].mxu0 %vm302_vm3, %v2576_v15  ;;  %v518_v49 = vsel %vm302_vm3, %v2576_v15, 0.0  ;;  %v1043_v15 = vld [vmem:[#allocation10] sm:$0xff] }
 0x4c4   :  { %2396 = vmatpush3.bf16.xpose.msk.msra.mxu0 %vm2999_vm2, %v2391_v9  ;;  %2261 = vmatprep.mubr.msk.f32.mxu0 %vm218_vm1, %v613_v16  ;;  %v1044_v16 = vld [vmem:[#allocation10 + $0x8] sm:$0xff] }
 0x4cb   :  { %2262 = vmatmul.mubr.msk.f32.vlgmr.msra.gmra.mrb[4].mxu0 %vm218_vm1, %v615_v18  ;;  %v1045_v18 = vld [vmem:[#allocation10 + $0x10] sm:$0xff] }
 0x596   :  { %v3069_v21 = vpop.f32.mrb[2].mxu0 }
 0x597   :  { %v3071_v22 = vpop.f32.mrb[3].mxu0 }
 0x59e   :  { %v2263_v23 = vpop.f32.mrb[4].mxu0 }
 0x59f   :  { %v700_v24 = vadd.f32 %v2263_v23, %v3009_v19  ;;  %v694_v25 = vpop.f32.mrb[5].mxu0  ;;  %v1046_v23 = vld [vmem:[#allocation10 + $0x18] sm:$0xff] }
 0x5a0   :  { %v695_v26 = vadd.f32 %v694_v25, %v3011_v20 }
 0x5a1   :  { %v706_v27 = vsel %vm302_vm3, %v700_v24, -inf }
 0x5a2   :  { %707 = vmax.xlane.f32.xlu0 %v706_v27  ;;  %v703_v28 = vsel %vm302_vm3, %v695_v26, -inf }
 0x5a3   :  { %704 = vmax.xlane.f32.xlu1 %v703_v28 }
 0x5b4   :  { %812 = vrot.lane.b32.xlu1 %v2987_v12, %s2814_s12 }
 0x5b8   :  { %814 = vrot.lane.b32.xlu1 %v2985_v10, %s2814_s12 }
 0x62f   :  { %v708_v29 = vpop.xlane.xlu0 %707 }
 0x630   :  { %v710_v30 = vsub.f32 %v700_v24, %v708_v29  ;;  %v705_v31 = vpop.xlane.xlu1 %704  ;;  %v2415_v24 = vpack.c.bf16 %v1046_v23, %v1045_v18 }
 0x631   :  { %v709_v32 = vsub.f32 %v695_v26, %v705_v31 }
 0x632   :  { %v713_v33 = vmul.f32 1.442695, %v710_v30 }
 0x633   :  { %v711_v34 = vmul.f32 1.442695, %v709_v32 }
 0x634   :  { %v813_v37 = vpop.permute.xlu1 %812 }
 0x635   :  { %2577 = vpow2.f32 %v711_v34 }
 0x636   :  { %2579 = vpow2.f32 %v713_v33 }
 0x638   :  { %v815_v10 = vpop.permute.xlu1 %814 }
 0x63f   :  { %v2578_v35 = vpop.eup %2577 }
 0x640   :  { %v2580_v36 = vpop.eup %2579  ;;  %2268 = vmatprep.mubr.msk.f32.mxu1 %vm302_vm3, %v2578_v35  ;;  %v715_v50 = vsel %vm302_vm3, %v2578_v35, 0.0 }
 0x641   :  { %2269 = vmatmul.mubr.msk.f32.vlgmr.msra.gmra.mrb[6].mxu1 %vm302_vm3, %v2580_v36  ;;  %v718_v51 = vsel %vm302_vm3, %v2580_v36, 0.0 }
 0x642   :  { %2406 = vmatpush3.bf16.xpose.msk.msra.mxu1 %vm2999_vm2, %v2401_v11  ;;  %2275 = vmatprep.mubr.msk.f32.mxu1 %vm218_vm1, %v813_v37 }
 0x649   :  { %2276 = vmatmul.mubr.msk.f32.vlgmr.msra.gmra.mrb[8].mxu1 %vm218_vm1, %v815_v10 }
 0x714   :  { %v3087_v12 = vpop.f32.mrb[6].mxu1 }
 0x715   :  { %v799_v38 = vpop.f32.mrb[7].mxu1 }
 0x71c   :  { %v2277_v39 = vpop.f32.mrb[8].mxu1 }
 0x71d   :  { %v900_v40 = vadd.f32 %v2277_v39, %v3009_v19  ;;  %v894_v43 = vpop.f32.mrb[9].mxu1  ;;  %v515_v19 = vsel %vm302_vm3, %v2574_v14, 0.0 }
 0x71e   :  { %v895_v44 = vadd.f32 %v894_v43, %v3011_v20  ;;  %v318_v20 = vsel %vm302_vm3, %v3029_v42, 0.0 }
 0x71f   :  { %v906_v47 = vsel %vm302_vm3, %v900_v40, -inf }
 0x720   :  { %907 = vmax.xlane.f32.xlu0 %v906_v47  ;;  %v903_v48 = vsel %vm302_vm3, %v895_v44, -inf }
 0x721   :  { %904 = vmax.xlane.f32.xlu1 %v903_v48 }
 0x725   :  { %519 = vadd.xlane.f32.xlu1 %v518_v49 }
 0x729   :  { %716 = vadd.xlane.f32.xlu1 %v715_v50 }
 0x72d   :  { %719 = vadd.xlane.f32.xlu1 %v718_v51 }
 0x736   :  { %2525 = vrot.lane.b32.xlu0 %v2993_v13, %s2815_s27 }
 0x755   :  { %516 = vadd.xlane.f32.xlu0 %v515_v19 }
 0x759   :  { %319 = vadd.xlane.f32.xlu0 %v318_v20 }
 0x7ad   :  { %v908_v52 = vpop.xlane.xlu0 %907 }
 0x7ae   :  { %v910_v53 = vsub.f32 %v900_v40, %v908_v52  ;;  %v905_v54 = vpop.xlane.xlu1 %904 }
 0x7af   :  { %v909_v55 = vsub.f32 %v895_v44, %v905_v54 }
 0x7b0   :  { %v913_v56 = vmul.f32 1.442695, %v910_v53 }
 0x7b1   :  { %v911_v57 = vmul.f32 1.442695, %v909_v55  ;;  %v2526_v58 = vpop.permute.xlu0 %2525 }
 0x7b2   :  { %2581 = vpow2.f32 %v913_v56  ;;  %v2528_v59 = vunpack.i.h.bf16 %v2526_v58  ;;  %v2527_v60 = vunpack.i.l.bf16 %v2526_v58  ;;  %v520_v61 = vpop.xlane.xlu1 %519 }
 0x7b3   :  { %2583 = vpow2.f32 %v911_v57 }
 0x7b4   :  { %v2407_v13 = vpack.c.bf16 %v2528_v59, %v2527_v60  ;;  %2585 = vrcp.f32 %v520_v61 }
 0x7b6   :  { %2408 = vmatprep.subr.bf16.mxu0 %v2407_v13  ;;  %v717_v4 = vpop.xlane.xlu1 %716 }
 0x7b7   :  { %2410 = vmatpush3.bf16.msra.mxu0 %v2407_v13 }
 0x7ba   :  { %v720_v6 = vpop.xlane.xlu1 %719 }
 0x7bc   :  { %v2582_v62 = vpop.eup %2581 }
 0x7bd   :  { %v2584_v63 = vpop.eup %2583  ;;  %v918_v2 = vsel %vm302_vm3, %v2582_v62, 0.0 }
 0x7be   :  { %v2586_v42 = vpop.eup %2585  ;;  %2282 = vmatprep.mubr.msk.f32.mxu0 %vm302_vm3, %v2584_v63  ;;  %v915_v0 = vsel %vm302_vm3, %v2584_v63, 0.0 }
 0x7bf   :  { %2283 = vmatmul.mubr.msk.f32.vlgmr.msra.gmra.mrb[6].mxu0 %vm302_vm3, %v2582_v62  ;;  %916 = vadd.xlane.f32.xlu1 %v915_v0  ;;  %v611_v1 = vmul.f32 %v2586_v42, %v3069_v21  ;;  %v2411_v21 = vpack.c.bf16 %v1044_v16, %v1043_v15 }
 0x7c1   :  { %1016 = vrot.lane.b32.xlu0 %v611_v1, %s2800_s22  ;;  %2412 = vmatprep.subr.bf16.mxu0 %v2411_v21 }
 0x7c2   :  { %2414 = vmatpush3.bf16.msra.mxu0 %v2411_v21 }
 0x7c3   :  { %919 = vadd.xlane.f32.xlu1 %v918_v2  ;;  %2416 = vmatprep.subr.bf16.mxu0 %v2415_v24  ;;  %v3161_v2 = vld [vmem:[#allocation7 + $0x8] sm:$0xff] }
 0x7c6   :  { %2418 = vmatpush3.bf16.msra.mxu0 %v2415_v24 }
 0x7c7   :  { %316 = vadd.xlane.f32.xlu1 %v315_v3  ;;  %v3163_v3 = vld [vmem:[#allocation7] sm:$0xff] }
 0x7e2   :  { %v517_v5 = vpop.xlane.xlu0 %516 }
 0x7e3   :  { %2587 = vrcp.f32 %v517_v5 }
 0x7e4   :  { %2589 = vrcp.f32 %v717_v4 }
 0x7e5   :  { %2591 = vrcp.f32 %v720_v6 }
 0x7e6   :  { %v320_v33 = vpop.xlane.xlu0 %319 }
 0x7ed   :  { %v2588_v7 = vpop.eup %2587 }
 0x7ee   :  { %v609_v8 = vmul.f32 %v2588_v7, %v3071_v22  ;;  %v2590_v9 = vpop.eup %2589 }
 0x7ef   :  { %v809_v11 = vmul.f32 %v2590_v9, %v799_v38  ;;  %v2592_v14 = vpop.eup %2591 }
 0x7f0   :  { %1014 = vrot.lane.b32.xlu1 %v609_v8, %s2800_s22  ;;  %v811_v41 = vmul.f32 %v2592_v14, %v3087_v12 }
 0x7f4   :  { %1022 = vrot.lane.b32.xlu1 %v809_v11, %s2816_s2 }
 0x7f8   :  { %1024 = vrot.lane.b32.xlu1 %v811_v41, %s2816_s2 }
 0x833   :  { %v1017_v38 = vpop.permute.xlu0 %1016 }
 0x84c   :  { %v917_v22 = vpop.xlane.xlu1 %916 }
 0x850   :  { %v920_v25 = vpop.xlane.xlu1 %919 }
 0x851   :  { %2593 = vrcp.f32 %v920_v25 }
 0x852   :  { %2595 = vrcp.f32 %v917_v22 }
 0x854   :  { %v317_v32 = vpop.xlane.xlu1 %316 }
 0x855   :  { %2597 = vrcp.f32 %v317_v32 }
 0x856   :  { %2599 = vrcp.f32 %v320_v33 }
 0x85b   :  { %v2594_v26 = vpop.eup %2593 }
 0x85c   :  { %v2596_v28 = vpop.eup %2595 }
 0x85f   :  { %v2598_v36 = vpop.eup %2597 }
 0x860   :  { %v2600_v37 = vpop.eup %2599  ;;  %v409_v10 = vmul.f32 %v2598_v36, %v3041_v46 }
 0x861   :  { %v411_v39 = vmul.f32 %v2600_v37, %v3039_v45  ;;  %v2106_v45 = vld [vmem:[%s3291_s6] ss:$0 sm:$0xff] }
 0x862   :  { %v1015_v34 = vpop.permute.xlu1 %1014 }
 0x863   :  { %v1036_v40 = vsel %vm218_vm1, %v409_v10, %v1015_v34  ;;  %v1037_v44 = vsel %vm218_vm1, %v411_v39, %v1017_v38 }
 0x866   :  { %v1023_v35 = vpop.permute.xlu1 %1022 }
 0x867   :  { %v1038_v47 = vsel %vm302_vm3, %v1036_v40, %v1023_v35 }
 0x86a   :  { %v1025_v12 = vpop.permute.xlu1 %1024 }
 0x86b   :  { %v1039_v49 = vsel %vm302_vm3, %v1037_v44, %v1025_v12 }
 0x892   :  { %v2284_v27 = vpop.f32.mrb[6].mxu0 }
 0x893   :  { %v1011_v29 = vmul.f32 %v2594_v26, %v2284_v27  ;;  %v999_v30 = vpop.f32.mrb[7].mxu0 }
 0x894   :  { %v1009_v31 = vmul.f32 %v2596_v28, %v999_v30 }
 0x895   :  { %1032 = vrot.lane.b32.xlu1 %v1011_v29, %s2817_s17 }
 0x896   :  { %1030 = vrot.lane.b32.xlu0 %v1009_v31, %s2817_s17 }
 0x907   :  { %v1033_v43 = vpop.permute.xlu1 %1032 }
 0x908   :  { %v1031_v48 = vpop.permute.xlu0 %1030  ;;  %v1042_v51 = vsel %vm1040_vm4, %v1039_v49, %v1033_v43 }
 0x909   :  { %v1041_v50 = vsel %vm1040_vm4, %v1038_v47, %v1031_v48 }
 0x90a   :  { %2293 = vmatprep.mubr.msk.f32.mxu0 %vm130_vm0, %v1041_v50 }
 0x90b   :  { %2294 = vmatmul.mubr.msk.f32.vlgmr.msra.gmra.mrb[8].mxu0 %vm130_vm0, %v1042_v51 }
 0x9de   :  { %v2295_v46 = vpop.f32.mrb[8].mxu0 }
 0x9df   :  { %v3129_v19 = vadd.f32 %v2295_v46, %v2106_v45  ;;  %v1128_v20 = vpop.f32.mrb[9].mxu0 }
 0x9e0   :  { %v3131_v52 = vadd.f32 %v2106_v45, %v1128_v20 }
 0x9e2   :  { %2300 = vmatprep.mubr.msk.f32.mxu1 %vm218_vm1, %v3131_v52  ;;  %v3137_v53 = vpack.i.bf16 %v3129_v19, %v3131_v52 }
 0x9e4   :  { %2535 = vrot.lane.b32.xlu1 %v3137_v53, %s2807_s19  ;;  %2530 = vrot.lane.b32.xlu0 %v3137_v53, %s2805_s18 }
 0x9e8   :  { %1337 = vrot.lane.b32.xlu1 %v3129_v19, %s2808_s20  ;;  %1335 = vrot.lane.b32.xlu0 %v3131_v52, %s2808_s20 }
 0x9ec   :  { %2540 = vrot.lane.b32.xlu1 %v3137_v53, %s2806_s4 }
 0xa56   :  { %v2536_v54 = vpop.permute.xlu1 %2535  ;;  %v2531_v55 = vpop.permute.xlu0 %2530 }
 0xa57   :  { %v2538_v56 = vunpack.i.h.bf16 %v2536_v54  ;;  %v2537_v57 = vunpack.i.l.bf16 %v2536_v54  ;;  %v2533_v58 = vunpack.i.h.bf16 %v2531_v55  ;;  %v2532_v59 = vunpack.i.l.bf16 %v2531_v55 }
 0xa59   :  { %v2419_v60 = vpack.c.bf16 %v2533_v58, %v2532_v59  ;;  %v2429_v13 = vpack.c.bf16 %v2538_v56, %v2537_v57 }
 0xa5a   :  { %v1338_v61 = vpop.permute.xlu1 %1337  ;;  %v1336_v1 = vpop.permute.xlu0 %1335 }
 0xa5b   :  { %2421 = vmatprep.subr.msk.bf16.mxu1 %vm2999_vm2, %v2419_v60 }
 0xa5c   :  { %2424 = vmatpush3.bf16.xpose.msk.msra.mxu1 %vm2999_vm2, %v2419_v60 }
 0xa5d   :  { %2431 = vmatprep.subr.msk.bf16.mxu1 %vm2999_vm2, %v2429_v13 }
 0xa5e   :  { %v2541_v62 = vpop.permute.xlu1 %2540 }
 0xa5f   :  { %v2543_v63 = vunpack.i.h.bf16 %v2541_v62  ;;  %v2542_v42 = vunpack.i.l.bf16 %v2541_v62 }
 0xa61   :  { %v2425_v0 = vpack.c.bf16 %v2543_v63, %v2542_v42 }
 0xa63   :  { %2301 = vmatmul.mubr.msk.f32.vlgmr.msra.gmra.mrb[10].mxu1 %vm218_vm1, %v3129_v19  ;;  %2426 = vmatprep.subr.bf16.mxu0 %v2425_v0 }
 0xa64   :  { %2428 = vmatpush3.bf16.msra.mxu0 %v2425_v0  ;;  %2434 = vmatpush3.bf16.xpose.msk.msra.mxu1 %vm2999_vm2, %v2429_v13 }
 0xa65   :  { %2314 = vmatprep.mubr.msk.f32.mxu1 %vm218_vm1, %v1336_v1 }
 0xa6b   :  { %2315 = vmatmul.mubr.msk.f32.vlgmr.msra.gmra.mrb[12].mxu1 %vm218_vm1, %v1338_v61 }
 0xb36   :  { %v2302_v4 = vpop.f32.mrb[10].mxu1 }
 0xb37   :  { %v1223_v5 = vadd.f32 %v2302_v4, %v3161_v2  ;;  %v1217_v6 = vpop.f32.mrb[11].mxu1 }
 0xb38   :  { %v1218_v7 = vadd.f32 %v1217_v6, %v3163_v3 }
 0xb39   :  { %v1229_v8 = vsel %vm302_vm3, %v1223_v5, -inf }
 0xb3a   :  { %1230 = vmax.xlane.f32.xlu1 %v1229_v8  ;;  %v1226_v9 = vsel %vm302_vm3, %v1218_v7, -inf }
 0xb3b   :  { %1227 = vmax.xlane.f32.xlu0 %v1226_v9 }
 0xb3e   :  { %v2316_v11 = vpop.f32.mrb[12].mxu1 }
 0xb3f   :  { %v1423_v14 = vadd.f32 %v2316_v11, %v3161_v2  ;;  %v1417_v41 = vpop.f32.mrb[13].mxu1 }
 0xb40   :  { %v1418_v15 = vadd.f32 %v1417_v41, %v3163_v3 }
 0xb41   :  { %v1429_v16 = vsel %vm302_vm3, %v1423_v14, -inf }
 0xb42   :  { %1430 = vmax.xlane.f32.xlu0 %v1429_v16  ;;  %v1426_v18 = vsel %vm302_vm3, %v1418_v15, -inf }
 0xb46   :  { %1427 = vmax.xlane.f32.xlu0 %v1426_v18 }
 0xb4b   :  { %2550 = vrot.lane.b32.xlu1 %v3137_v53, %s2812_s26 }
 0xb4f   :  { %1535 = vrot.lane.b32.xlu1 %v3131_v52, %s2813_s3 }
 0xb53   :  { %2560 = vrot.lane.b32.xlu1 %v3137_v53, %s2811_s25 }
 0xb5c   :  { %2545 = vrot.lane.b32.xlu0 %v3137_v53, %s2810_s24 }
 0xb60   :  { %1537 = vrot.lane.b32.xlu0 %v3129_v19, %s2813_s3 }
 0xbc7   :  { %v1231_v21 = vpop.xlane.xlu1 %1230 }
 0xbc8   :  { %v1233_v23 = vsub.f32 %v1223_v5, %v1231_v21  ;;  %v1228_v24 = vpop.xlane.xlu0 %1227 }
 0xbc9   :  { %v1232_v22 = vsub.f32 %v1218_v7, %v1228_v24 }
 0xbca   :  { %v1236_v25 = vmul.f32 1.442695, %v1233_v23 }
 0xbcb   :  { %v1234_v26 = vmul.f32 1.442695, %v1232_v22  ;;  %v2551_v30 = vpop.permute.xlu1 %2550 }
 0xbcc   :  { %v2553_v35 = vunpack.i.h.bf16 %v2551_v30  ;;  %v2552_v10 = vunpack.i.l.bf16 %v2551_v30 }
 0xbcd   :  { %2601 = vpow2.f32 %v1234_v26 }
 0xbce   :  { %2603 = vpow2.f32 %v1236_v25  ;;  %v2439_v40 = vpack.c.bf16 %v2553_v35, %v2552_v10 }
 0xbcf   :  { %v1431_v27 = vpop.xlane.xlu0 %1430  ;;  %v1536_v47 = vpop.permute.xlu1 %1535 }
 0xbd0   :  { %v1433_v28 = vsub.f32 %v1423_v14, %v1431_v27 }
 0xbd2   :  { %v1436_v32 = vmul.f32 1.442695, %v1433_v28 }
 0xbd3   :  { %v1428_v29 = vpop.xlane.xlu0 %1427  ;;  %v2561_v58 = vpop.permute.xlu1 %2560 }
 0xbd4   :  { %v1432_v31 = vsub.f32 %v1418_v15, %v1428_v29  ;;  %v2563_v0 = vunpack.i.h.bf16 %v2561_v58  ;;  %v2562_v1 = vunpack.i.l.bf16 %v2561_v58 }
 0xbd6   :  { %v1434_v33 = vmul.f32 1.442695, %v1432_v31  ;;  %v2449_v6 = vpack.c.bf16 %v2563_v0, %v2562_v1 }
 0xbd7   :  { %v3183_v34 = vpop.eup %2601  ;;  %v2546_v36 = vpop.permute.xlu0 %2545 }
 0xbd8   :  { %v3185_v37 = vpop.eup %2603  ;;  %2605 = vpow2.f32 %v1434_v33  ;;  %v2548_v12 = vunpack.i.h.bf16 %v2546_v36  ;;  %v2547_v38 = vunpack.i.l.bf16 %v2546_v36  ;;  %2307 = vmatprep.mubr.msk.f32.mxu0 %vm302_vm3, %v3183_v34 }
 0xbd9   :  { %2607 = vpow2.f32 %v1436_v32  ;;  %2308 = vmatmul.mubr.msk.f32.vlgmr.msra.gmra.mrb[10].mxu0 %vm302_vm3, %v3185_v37 }
 0xbda   :  { %v2435_v39 = vpack.c.bf16 %v2548_v12, %v2547_v38 }
 0xbdb   :  { %v1538_v48 = vpop.permute.xlu0 %1537 }
 0xbdc   :  { %2436 = vmatprep.subr.bf16.mxu0 %v2435_v39 }
 0xbdd   :  { %2438 = vmatpush3.bf16.msra.mxu0 %v2435_v39 }
 0xbde   :  { %2441 = vmatprep.subr.msk.bf16.mxu0 %vm2999_vm2, %v2439_v40 }
 0xbe2   :  { %v2606_v43 = vpop.eup %2605 }
 0xbe3   :  { %v3193_v44 = vpop.eup %2607  ;;  %2321 = vmatprep.mubr.msk.f32.mxu0 %vm302_vm3, %v2606_v43  ;;  %v1438_v17 = vsel %vm302_vm3, %v2606_v43, 0.0  ;;  %v1241_v43 = vsel %vm302_vm3, %v3185_v37, 0.0 }
 0xbe4   :  { %2322 = vmatmul.mubr.msk.f32.vlgmr.msra.gmra.mrb[12].mxu0 %vm302_vm3, %v3193_v44  ;;  %v1441_v24 = vsel %vm302_vm3, %v3193_v44, 0.0 }
 0xbe5   :  { %2328 = vmatprep.mubr.msk.f32.mxu0 %vm218_vm1, %v1536_v47 }
 0xbe6   :  { %2444 = vmatpush3.bf16.xpose.msk.msra.mxu0 %vm2999_vm2, %v2439_v40 }
 0xbed   :  { %2329 = vmatmul.mubr.msk.f32.vlgmr.msra.gmra.mrb[14].mxu0 %vm218_vm1, %v1538_v48 }
 0xcac   :  { %v3202_v49 = vpop.f32.mrb[10].mxu0 }
 0xcad   :  { %v3204_v50 = vpop.f32.mrb[11].mxu0 }
 0xcb7   :  { %v3206_v51 = vpop.f32.mrb[12].mxu0 }
 0xcb8   :  { %v3208_v45 = vpop.f32.mrb[13].mxu0 }
 0xcc0   :  { %v2330_v46 = vpop.f32.mrb[14].mxu0 }
 0xcc1   :  { %v1623_v20 = vadd.f32 %v2330_v46, %v3161_v2  ;;  %v1617_v54 = vpop.f32.mrb[15].mxu0 }
 0xcc2   :  { %v1618_v55 = vadd.f32 %v1617_v54, %v3163_v3 }
 0xcc3   :  { %v1629_v56 = vsel %vm302_vm3, %v1623_v20, -inf }
 0xcc4   :  { %1630 = vmax.xlane.f32.xlu0 %v1629_v56  ;;  %v1626_v57 = vsel %vm302_vm3, %v1618_v55, -inf  ;;  %v1965_v56 = vld [vmem:[#allocation11] sm:$0xff] }
 0xcc5   :  { %1627 = vmax.xlane.f32.xlu1 %v1626_v57  ;;  %v1966_v57 = vld [vmem:[#allocation11 + $0x8] sm:$0xff] }
 0xcc6   :  { %v2459_v58 = vpack.c.bf16 %v1966_v57, %v1965_v56 }
 0xcd6   :  { %1735 = vrot.lane.b32.xlu1 %v3131_v52, %s2814_s12 }
 0xcda   :  { %2555 = vrot.lane.b32.xlu0 %v3137_v53, %s2809_s23 }
 0xcde   :  { %1737 = vrot.lane.b32.xlu0 %v3129_v19, %s2814_s12 }
 0xd51   :  { %v1631_v59 = vpop.xlane.xlu0 %1630 }
 0xd52   :  { %v1633_v60 = vsub.f32 %v1623_v20, %v1631_v59  ;;  %v1628_v61 = vpop.xlane.xlu1 %1627 }
 0xd53   :  { %v1632_v13 = vsub.f32 %v1618_v55, %v1628_v61  ;;  %v1968_v61 = vld [vmem:[#allocation11 + $0x18] sm:$0xff] }
 0xd54   :  { %v1636_v62 = vmul.f32 1.442695, %v1633_v60  ;;  %v1967_v60 = vld [vmem:[#allocation11 + $0x10] sm:$0xff] }
 0xd55   :  { %v1634_v63 = vmul.f32 1.442695, %v1632_v13  ;;  %v2556_v42 = vpop.permute.xlu0 %2555 }
 0xd56   :  { %v2558_v4 = vunpack.i.h.bf16 %v2556_v42  ;;  %v2557_v5 = vunpack.i.l.bf16 %v2556_v42  ;;  %v1736_v8 = vpop.permute.xlu1 %1735 }
 0xd57   :  { %2609 = vpow2.f32 %v1634_v63 }
 0xd58   :  { %2611 = vpow2.f32 %v1636_v62  ;;  %v2445_v52 = vpack.c.bf16 %v2558_v4, %v2557_v5 }
 0xd59   :  { %v1738_v9 = vpop.permute.xlu0 %1737 }
 0xd5a   :  { %2446 = vmatprep.subr.bf16.mxu1 %v2445_v52 }
 0xd5b   :  { %2448 = vmatpush3.bf16.msra.mxu1 %v2445_v52 }
 0xd5c   :  { %2451 = vmatprep.subr.msk.bf16.mxu1 %vm2999_vm2, %v2449_v6 }
 0xd61   :  { %v2610_v19 = vpop.eup %2609 }
 0xd62   :  { %v2612_v7 = vpop.eup %2611  ;;  %2335 = vmatprep.mubr.msk.f32.mxu1 %vm302_vm3, %v2610_v19  ;;  %v1638_v22 = vsel %vm302_vm3, %v2610_v19, 0.0 }
 0xd63   :  { %2336 = vmatmul.mubr.msk.f32.vlgmr.msra.gmra.mrb[14].mxu1 %vm302_vm3, %v2612_v7 }
 0xd64   :  { %2454 = vmatpush3.bf16.xpose.msk.msra.mxu1 %vm2999_vm2, %v2449_v6  ;;  %2342 = vmatprep.mubr.msk.f32.mxu1 %vm218_vm1, %v1736_v8 }
 0xd6b   :  { %2343 = vmatmul.mubr.msk.f32.vlgmr.msra.gmra.mrb[16].mxu1 %vm218_vm1, %v1738_v9 }
 0xe36   :  { %v2337_v11 = vpop.f32.mrb[14].mxu1 }
 0xe37   :  { %v1722_v14 = vpop.f32.mrb[15].mxu1 }
 0xe3e   :  { %v2344_v41 = vpop.f32.mrb[16].mxu1 }
 0xe3f   :  { %v1823_v15 = vadd.f32 %v2344_v41, %v3161_v2  ;;  %v1817_v16 = vpop.f32.mrb[17].mxu1  ;;  %v1641_v2 = vsel %vm302_vm3, %v2612_v7, 0.0 }
 0xe40   :  { %v1818_v18 = vadd.f32 %v1817_v16, %v3163_v3  ;;  %v1238_v3 = vsel %vm302_vm3, %v3183_v34, 0.0 }
 0xe41   :  { %v1829_v21 = vsel %vm302_vm3, %v1823_v15, -inf }
 0xe42   :  { %1830 = vmax.xlane.f32.xlu0 %v1829_v21  ;;  %v1826_v23 = vsel %vm302_vm3, %v1818_v18, -inf }
 0xe43   :  { %1827 = vmax.xlane.f32.xlu1 %v1826_v23 }
 0xe47   :  { %1439 = vadd.xlane.f32.xlu1 %v1438_v17 }
 0xe4b   :  { %1442 = vadd.xlane.f32.xlu1 %v1441_v24 }
 0xe4f   :  { %1639 = vadd.xlane.f32.xlu1 %v1638_v22 }
 0xe53   :  { %1642 = vadd.xlane.f32.xlu1 %v1641_v2 }
 0xe58   :  { %2565 = vrot.lane.b32.xlu0 %v3137_v53, %s2815_s27 }
 0xe77   :  { %1239 = vadd.xlane.f32.xlu0 %v1238_v3 }
 0xecf   :  { %v1831_v25 = vpop.xlane.xlu0 %1830 }
 0xed0   :  { %v1833_v26 = vsub.f32 %v1823_v15, %v1831_v25  ;;  %v1828_v27 = vpop.xlane.xlu1 %1827 }
 0xed1   :  { %v1832_v28 = vsub.f32 %v1818_v18, %v1828_v27 }
 0xed2   :  { %v1836_v29 = vmul.f32 1.442695, %v1833_v26 }
 0xed3   :  { %v1834_v30 = vmul.f32 1.442695, %v1832_v28  ;;  %v2566_v31 = vpop.permute.xlu0 %2565 }
 0xed4   :  { %v2568_v32 = vunpack.i.h.bf16 %v2566_v31  ;;  %v2567_v33 = vunpack.i.l.bf16 %v2566_v31  ;;  %v1440_v35 = vpop.xlane.xlu1 %1439 }
 0xed5   :  { %2613 = vpow2.f32 %v1834_v30 }
 0xed6   :  { %2615 = vpow2.f32 %v1836_v29  ;;  %v2455_v36 = vpack.c.bf16 %v2568_v32, %v2567_v33 }
 0xed8   :  { %2456 = vmatprep.subr.bf16.mxu0 %v2455_v36  ;;  %v1443_v10 = vpop.xlane.xlu1 %1442 }
 0xed9   :  { %2458 = vmatpush3.bf16.msra.mxu0 %v2455_v36 }
 0xeda   :  { %2460 = vmatprep.subr.bf16.mxu0 %v2459_v58 }
 0xedc   :  { %v1640_v53 = vpop.xlane.xlu1 %1639 }
 0xedf   :  { %v2614_v12 = vpop.eup %2613 }
 0xee0   :  { %v2616_v34 = vpop.eup %2615  ;;  %2349 = vmatprep.mubr.msk.f32.mxu0 %vm302_vm3, %v2614_v12  ;;  %v1643_v38 = vpop.xlane.xlu1 %1642  ;;  %v1838_v39 = vsel %vm302_vm3, %v2614_v12, 0.0 }
 0xee1   :  { %2617 = vrcp.f32 %v1643_v38  ;;  %2350 = vmatmul.mubr.msk.f32.vlgmr.msra.gmra.mrb[16].mxu0 %vm302_vm3, %v2616_v34  ;;  %1839 = vadd.xlane.f32.xlu1 %v1838_v39  ;;  %v1841_v40 = vsel %vm302_vm3, %v2616_v34, 0.0 }
 0xee2   :  { %2619 = vrcp.f32 %v1440_v35  ;;  %2462 = vmatpush3.bf16.msra.mxu0 %v2459_v58 }
 0xee3   :  { %2621 = vrcp.f32 %v1443_v10 }
 0xee4   :  { %2623 = vrcp.f32 %v1640_v53 }
 0xee5   :  { %1842 = vadd.xlane.f32.xlu1 %v1841_v40 }
 0xee9   :  { %1242 = vadd.xlane.f32.xlu1 %v1241_v43 }
 0xeeb   :  { %v2618_v44 = vpop.eup %2617 }
 0xeec   :  { %v1734_v47 = vmul.f32 %v2618_v44, %v2337_v11  ;;  %v2620_v48 = vpop.eup %2619 }
 0xeed   :  { %v1532_v46 = vmul.f32 %v2620_v48, %v3208_v45  ;;  %v2622_v20 = vpop.eup %2621  ;;  %v2463_v45 = vpack.c.bf16 %v1968_v61, %v1967_v60 }
 0xeee   :  { %1947 = vrot.lane.b32.xlu0 %v1734_v47, %s2816_s2  ;;  %v1534_v54 = vmul.f32 %v2622_v20, %v3206_v51  ;;  %v2624_v55 = vpop.eup %2623 }
 0xeef   :  { %v1732_v37 = vmul.f32 %v2624_v55, %v1722_v14  ;;  %2464 = vmatprep.subr.bf16.mxu0 %v2463_v45 }
 0xef0   :  { %2466 = vmatpush3.bf16.msra.mxu0 %v2463_v45 }
 0xefa   :  { %1937 = vrot.lane.b32.xlu1 %v1532_v46, %s2800_s22 }
 0xefe   :  { %1939 = vrot.lane.b32.xlu1 %v1534_v54, %s2800_s22 }
 0xf02   :  { %1945 = vrot.lane.b32.xlu1 %v1732_v37, %s2816_s2 }
 0xf04   :  { %v1240_v5 = vpop.xlane.xlu0 %1239 }
 0xf60   :  { %v1948_v21 = vpop.permute.xlu0 %1947 }
 0xf6e   :  { %v1840_v59 = vpop.xlane.xlu1 %1839 }
 0xf6f   :  { %2625 = vrcp.f32 %v1840_v59 }
 0xf72   :  { %v1843_v13 = vpop.xlane.xlu1 %1842 }
 0xf73   :  { %2627 = vrcp.f32 %v1843_v13 }
 0xf74   :  { %2629 = vrcp.f32 %v1240_v5 }
 0xf76   :  { %v1243_v4 = vpop.xlane.xlu1 %1242 }
 0xf77   :  { %2631 = vrcp.f32 %v1243_v4 }
 0xf79   :  { %v2626_v62 = vpop.eup %2625 }
 0xf7a   :  { %v1938_v52 = vpop.permute.xlu1 %1937 }
 0xf7d   :  { %v2628_v0 = vpop.eup %2627 }
 0xf7e   :  { %v1940_v6 = vpop.permute.xlu1 %1939  ;;  %v2630_v19 = vpop.eup %2629 }
 0xf7f   :  { %v1332_v9 = vmul.f32 %v2630_v19, %v3204_v50 }
 0xf81   :  { %v2632_v7 = vpop.eup %2631  ;;  %v1959_v14 = vsel %vm218_vm1, %v1332_v9, %v1938_v52 }
 0xf82   :  { %v1946_v8 = vpop.permute.xlu1 %1945  ;;  %v1334_v11 = vmul.f32 %v2632_v7, %v3202_v49  ;;  %v2133_v49 = vld [vmem:[%s3293_s8] ss:$0 sm:$0xff] }
 0xf83   :  { %v1961_v41 = vsel %vm302_vm3, %v1959_v14, %v1946_v8 }
 0xf84   :  { %v1960_v16 = vsel %vm218_vm1, %v1334_v11, %v1940_v6 }
 0xf85   :  { %v1962_v23 = vsel %vm302_vm3, %v1960_v16, %v1948_v21 }
 0xfb4   :  { %v2351_v51 = vpop.f32.mrb[16].mxu0 }
 0xfb5   :  { %v1922_v63 = vpop.f32.mrb[17].mxu0  ;;  %v1934_v1 = vmul.f32 %v2628_v0, %v2351_v51 }
 0xfb6   :  { %v1932_v42 = vmul.f32 %v2626_v62, %v1922_v63 }
 0xfb8   :  { %1953 = vrot.lane.b32.xlu1 %v1932_v42, %s2817_s17 }
 0xfbc   :  { %1955 = vrot.lane.b32.xlu1 %v1934_v1, %s2817_s17 }
0x102a   :  { %v1954_v15 = vpop.permute.xlu1 %1953 }
0x102b   :  { %v1963_v18 = vsel %vm1040_vm4, %v1961_v41, %v1954_v15 }
0x102c   :  { %2360 = vmatprep.mubr.msk.f32.mxu0 %vm130_vm0, %v1963_v18 }
0x102e   :  { %v1956_v17 = vpop.permute.xlu1 %1955 }
0x102f   :  { %v1964_v24 = vsel %vm1040_vm4, %v1962_v23, %v1956_v17 }
0x1030   :  { %2361 = vmatmul.mubr.msk.f32.vlgmr.msra.gmra.mrb[18].mxu0 %vm130_vm0, %v1964_v24 }
0x1103   :  { %v2362_v50 = vpop.f32.mrb[18].mxu0 }
0x1104   :  { %v2054_v22 = vadd.f32 %v2362_v50, %v2133_v49  ;;  %v2048_v2 = vpop.f32.mrb[19].mxu0 }
0x1105   :  { %v2049_v3 = vadd.f32 %v2133_v49, %v2048_v2 }
0x1106   :  { %2058 = vst.msk [vmem:[#allocation13 + $0x8] sm:$0xff] %vm130_vm0, %v2054_v22 }
0x1107   :  { %2057 = vst.msk [vmem:[#allocation13] sm:$0xff] %vm130_vm0, %v2049_v3 }
0x1108   :  { %2776 = shalt.err (!%p2773_p10)
}
0x1109   :  { %s2777_s14 = scalar_lea.hbm %s3294_s9, 256 }
0x110a   :  { %p2778_p11 = scmp.ne.s32.totalorder %s3294_s9, %s2777_s14  ;;  %p2781_p12 = scmp.lt.u32.totalorder %s2777_s14, %s3294_s9 }
0x110c   :  { %p2783_p13 = pnand %p2781_p12, %p2778_p11 }
0x110e   :  { %2786 = shalt.err (!%p2783_p13)
}
0x110f   :  { %2070 = dma.vmem_to_hbm [thread:$0]  %s2065_s13, 256, %s3294_s9, [#allocation4], %s2799_s21, %s2799_s21, %s2800_s22  }
0x1110   :  { %2795 = dma.done.wait [#allocation4], 256  }
0x1111   :  { %2796 = vsyncadd [#allocation4], 4294967040 }
0x1112   :  { %2074 = vsyncpa [#allocation3], 1 }
0x1113   :  { %2075 = vsyncpa [#allocation6], 1 }
0x1114   :  { %2076 = vsyncpa [#allocation9], 1 }
0x1115   :  { %2077 = vsyncpa [#allocation12], 1 }
0x1116   :  { %2078 = vsyncpa [#allocation4], 1 }

</bundles_post_ra>
